<compile_context>
chip_gen: v5e
topology: v5e:2x2
jax: 0.10.0
libtpu: 0.0.40
codegen_flags: <defaults>
</compile_context>

<pallas_src>
import functools

import jax
import jax.numpy as jnp
from jax.experimental import pallas as pl
from jax.experimental.pallas import tpu as pltpu


def _convblock_kernel(x_ref, w_ref, scale_ref, shift_ref, o_ref, xpad_ref, *, B, H, W, C_in):
    # x_ref:     (B, H, W, C_in)       bf16  unpadded NHWC batch tile
    # w_ref:     (9*C_in, C_out_pad)   bf16  im2col-ordered conv weights (k = dy*3*C_in + dx*C_in + c)
    # scale_ref: (1, C_out_pad)        f32   folded BN scale = gamma / sqrt(var + eps)
    # shift_ref: (1, C_out_pad)        f32   folded BN shift = beta - mean * scale
    # o_ref:     (B, H*W, C_out_pad)   f32   lane-dense output
    # xpad_ref:  (B, H+2, W+2, C_in)   bf16  VMEM scratch with zero halo (fused padding)

    # --- fused zero padding: zero the halo scratch, then copy the interior in --------------
    xpad_ref[...] = jnp.zeros_like(xpad_ref)
    xpad_ref[:, 1:H + 1, 1:W + 1, :] = x_ref[...]
    xp = xpad_ref[...]                                               # (B, H+2, W+2, C_in)

    # --- in-kernel im2col -------------------------------------------------------------------
    # Only the 3 dx shifts move data along the sublane (W) axis, done once and shared by all
    # taps; the dy shifts are slices along H (outer, free axis).
    # cols[b, h, x, dx*C_in + c]               = xp[b, h,    x+dx, c]
    cols = jnp.concatenate([xp[:, :, dx:dx + W, :] for dx in range(3)], axis=-1)   # (B, H+2, W, 3*C_in)
    # patch[b, y, x, dy*3*C_in + dx*C_in + c]  = xp[b, y+dy, x+dx, c]
    patch = jnp.concatenate([cols[:, dy:dy + H, :, :] for dy in range(3)], axis=-1)  # (B, H, W, 9*C_in)
    lhs = patch.reshape(B * H * W, 9 * C_in)          # layout-preserving when W % 8 == 0

    # --- single MXU matmul, f32 accumulation (no per-tap accumulator needed) -----------------
    acc = jnp.dot(lhs, w_ref[...], preferred_element_type=jnp.float32)   # (B*H*W, C_out_pad) f32

    # --- folded BatchNorm affine + SiLU, f32 epilogue ----------------------------------------
    y = acc * scale_ref[...] + shift_ref[...]
    # numerically stable sigmoid: sig(y) = 1/(1+e^-y) for y>=0, e^y/(1+e^y) for y<0
    z = jnp.exp(-jnp.abs(y))
    inv = pl.reciprocal(1.0 + z, approx=False)        # approx=True -> EUP, if tolerance allows
    sig = jnp.where(y >= 0.0, inv, z * inv)
    o_ref[...] = (y * sig).reshape(B, H * W, y.shape[-1]).astype(o_ref.dtype)


def _pick_batch_tile(N, H, W, C_in, c_out_pad, vmem_budget=6 * 1024 * 1024):
    """Largest divisor of N whose working set fits the VMEM budget, keeping >=2 grid steps
    when N allows it (so the 'parallel' batch axis can shard across v7x's two TensorCores)."""
    per_img = (
        2 * (H * W * C_in * 2)              # input block, double-buffered, bf16
        + (H + 2) * (W + 2) * C_in * 2      # zero-padded scratch, bf16
        + H * W * 9 * C_in * 2              # im2col operand, bf16
        + H * W * c_out_pad * 4             # f32 accumulator
        + 2 * (H * W * c_out_pad * 4)       # output block, double-buffered, f32
    )
    b_tile = 1
    for cand in range(1, N + 1):
        if N % cand == 0 and cand * per_img <= vmem_budget:
            b_tile = cand
    while b_tile > 1 and N // b_tile < 2:
        b_tile -= 1
        while N % b_tile:
            b_tile -= 1
    return b_tile


def convblock_pallas(x_nchw, w_oihw, gamma, beta, running_mean, running_var, eps=1e-5):
    """x_nchw: (N, C_in, H, W) float32.  Returns (N, C_out, H, W) float32."""
    N, C_in, H, W = x_nchw.shape
    C_out = w_oihw.shape[0]
    c_out_pad = 128 * pl.cdiv(C_out, 128)            # lane-dense matmul N-dim / output stores

    # --- wrapper-side glue: layout + BN folding (spatial padding is fused into the kernel) ---
    x_nhwc = jnp.transpose(x_nchw, (0, 2, 3, 1)).astype(jnp.bfloat16)        # NCHW -> NHWC, bf16
    # OIHW -> im2col weight layout: row index = dy*3*C_in + dx*C_in + c
    w_mat = jnp.transpose(w_oihw, (2, 3, 1, 0)).reshape(9 * C_in, C_out)
    w_mat = jnp.pad(w_mat, ((0, 0), (0, c_out_pad - C_out))).astype(jnp.bfloat16)
    scale = gamma / jnp.sqrt(running_var + eps)
    shift = beta - running_mean * scale
    scale_p = jnp.pad(scale, (0, c_out_pad - C_out)).reshape(1, c_out_pad).astype(jnp.float32)
    shift_p = jnp.pad(shift, (0, c_out_pad - C_out)).reshape(1, c_out_pad).astype(jnp.float32)

    b_tile = _pick_batch_tile(N, H, W, C_in, c_out_pad)
    grid = (N // b_tile,)

    kernel = functools.partial(_convblock_kernel, B=b_tile, H=H, W=W, C_in=C_in)

    out = pl.pallas_call(
        kernel,
        out_shape=jax.ShapeDtypeStruct((N, H * W, c_out_pad), jnp.float32),
        grid=grid,
        in_specs=[
            pl.BlockSpec((b_tile, H, W, C_in), lambda i: (i, 0, 0, 0)),
            pl.BlockSpec((9 * C_in, c_out_pad), lambda i: (0, 0)),
            pl.BlockSpec((1, c_out_pad), lambda i: (0, 0)),
            pl.BlockSpec((1, c_out_pad), lambda i: (0, 0)),
        ],
        out_specs=pl.BlockSpec((b_tile, H * W, c_out_pad), lambda i: (i, 0, 0)),
        scratch_shapes=[pltpu.VMEM((b_tile, H + 2, W + 2, C_in), jnp.bfloat16)],
        compiler_params=pltpu.CompilerParams(
            dimension_semantics=("parallel",),
            vmem_limit_bytes=32 * 1024 * 1024,
        ),
    )(x_nhwc, w_mat, scale_p, shift_p)

    out = out[:, :, :C_out].reshape(N, H, W, C_out)   # strip channel padding
    return jnp.transpose(out, (0, 3, 1, 2))           # NHWC -> NCHW


def _reference(x_nchw, w_oihw, gamma, beta, running_mean, running_var, eps=1e-5):
    """Pure-JAX reference mirroring the PyTorch forward (BN in eval mode), using the same
    bf16-operand / f32-accumulate precision as the kernel."""
    y = jax.lax.conv_general_dilated(
        x_nchw.astype(jnp.bfloat16), w_oihw.astype(jnp.bfloat16),
        window_strides=(1, 1), padding=((1, 1), (1, 1)),
        dimension_numbers=("NCHW", "OIHW", "NCHW"),
        preferred_element_type=jnp.float32,
    )
    scale = gamma / jnp.sqrt(running_var + eps)
    shift = beta - running_mean * scale
    y = y * scale[None, :, None, None] + shift[None, :, None, None]
    return y * jax.nn.sigmoid(y)


if __name__ == "__main__":
    key = jax.random.PRNGKey(0)
    k_x, k_w, k_g, k_b, k_m, k_v = jax.random.split(key, 6)

    N, C_in, H, W = 2, 4, 16, 16
    C_out = 8

    x = jax.random.normal(k_x, (N, C_in, H, W), dtype=jnp.float32)
    # Conv2d weight (out_channels, in_channels/groups, kH, kW), groups=1, bias=False.
    w = jax.random.normal(k_w, (C_out, C_in, 3, 3), dtype=jnp.float32) * 0.1
    # Deterministic BatchNorm2d parameters / running stats (inference mode).
    gamma = 1.0 + 0.1 * jax.random.normal(k_g, (C_out,), dtype=jnp.float32)
    beta = 0.1 * jax.random.normal(k_b, (C_out,), dtype=jnp.float32)
    running_mean = 0.1 * jax.random.normal(k_m, (C_out,), dtype=jnp.float32)
    running_var = 1.0 + 0.1 * jax.random.uniform(k_v, (C_out,), dtype=jnp.float32)

    out = convblock_pallas(x, w, gamma, beta, running_mean, running_var)
    out = jax.block_until_ready(out)

    ref = _reference(x, w, gamma, beta, running_mean, running_var)
    assert out.shape == (N, C_out, H, W)
    max_err = jnp.max(jnp.abs(out - ref))
    assert jnp.allclose(out, ref, atol=1e-3, rtol=1e-3), f"mismatch vs reference (max abs err={max_err})"

    print("KERNEL_OK")
</pallas_src>

<mosaic_0001>
module attributes {stable_mosaic.version = 11 : i64} {
  func.func @_convblock_kernel(%arg0: i32, %arg1: memref<1x16x16x4xbf16, #tpu.memory_space<vmem>>, %arg2: memref<36x128xbf16, #tpu.memory_space<vmem>>, %arg3: memref<1x128xf32, #tpu.memory_space<vmem>>, %arg4: memref<1x128xf32, #tpu.memory_space<vmem>>, %arg5: memref<1x256x128xf32, #tpu.memory_space<vmem>>, %arg6: memref<1x18x18x4xbf16, #tpu.memory_space<vmem>>) attributes {dimension_semantics = [#tpu.dimension_semantics<parallel>], iteration_bounds = array<i64: 2>, scalar_prefetch = 0 : i64, scratch_operands = 1 : i64, tpu.core_type = #tpu.core_type<tc>, window_params = [{transform_indices = @transform_0, window_bounds = array<i64: 1, 16, 16, 4>}, {pipeline_mode = #tpu.pipeline_mode<synchronous>, transform_indices = @transform_1, window_bounds = array<i64: 36, 128>}, {pipeline_mode = #tpu.pipeline_mode<synchronous>, transform_indices = @transform_2, window_bounds = array<i64: 1, 128>}, {pipeline_mode = #tpu.pipeline_mode<synchronous>, transform_indices = @transform_3, window_bounds = array<i64: 1, 128>}, {transform_indices = @transform_4, window_bounds = array<i64: 1, 256, 128>}]} {
    %cst = arith.constant 0.000000e+00 : bf16
    %0 = vector.broadcast %cst : bf16 to vector<1x18x18x4xbf16>
    %c0 = arith.constant 0 : index
    %c0_0 = arith.constant 0 : index
    %c0_1 = arith.constant 0 : index
    %c0_2 = arith.constant 0 : index
    %1 = vector.load %arg6[%c0, %c0_0, %c0_1, %c0_2] : memref<1x18x18x4xbf16, #tpu.memory_space<vmem>>, vector<1x18x18x4xbf16>
    tpu.vector_store %arg6[%c0, %c0_0, %c0_1, %c0_2], %0 {strides = array<i32>} : memref<1x18x18x4xbf16, #tpu.memory_space<vmem>>, vector<1x18x18x4xbf16>,
    %c0_3 = arith.constant 0 : index
    %c0_4 = arith.constant 0 : index
    %c0_5 = arith.constant 0 : index
    %c0_6 = arith.constant 0 : index
    %2 = vector.load %arg1[%c0_3, %c0_4, %c0_5, %c0_6] : memref<1x16x16x4xbf16, #tpu.memory_space<vmem>>, vector<1x16x16x4xbf16>
    %c0_7 = arith.constant 0 : index
    %c1 = arith.constant 1 : index
    %c1_8 = arith.constant 1 : index
    %c0_9 = arith.constant 0 : index
    %3 = vector.load %arg6[%c0_7, %c1, %c1_8, %c0_9] : memref<1x18x18x4xbf16, #tpu.memory_space<vmem>>, vector<1x16x16x4xbf16>
    tpu.vector_store %arg6[%c0_7, %c1, %c1_8, %c0_9], %2 {strides = array<i32>} : memref<1x18x18x4xbf16, #tpu.memory_space<vmem>>, vector<1x16x16x4xbf16>,
    %c0_10 = arith.constant 0 : index
    %c0_11 = arith.constant 0 : index
    %c0_12 = arith.constant 0 : index
    %c0_13 = arith.constant 0 : index
    %4 = vector.load %arg6[%c0_10, %c0_11, %c0_12, %c0_13] : memref<1x18x18x4xbf16, #tpu.memory_space<vmem>>, vector<1x18x18x4xbf16>
    %5 = vector.extract_strided_slice %4 {offsets = [0, 0, 0, 0], sizes = [1, 18, 16, 4], strides = [1, 1, 1, 1]} : vector<1x18x18x4xbf16> to vector<1x18x16x4xbf16>
    %6 = vector.extract_strided_slice %4 {offsets = [0, 0, 1, 0], sizes = [1, 18, 16, 4], strides = [1, 1, 1, 1]} : vector<1x18x18x4xbf16> to vector<1x18x16x4xbf16>
    %7 = vector.extract_strided_slice %4 {offsets = [0, 0, 2, 0], sizes = [1, 18, 16, 4], strides = [1, 1, 1, 1]} : vector<1x18x18x4xbf16> to vector<1x18x16x4xbf16>
    %8 = tpu.concatenate %5, %6, %7 in 3 : vector<1x18x16x4xbf16>, vector<1x18x16x4xbf16>, vector<1x18x16x4xbf16> -> vector<1x18x16x12xbf16>
    %9 = vector.extract_strided_slice %8 {offsets = [0, 0, 0, 0], sizes = [1, 16, 16, 12], strides = [1, 1, 1, 1]} : vector<1x18x16x12xbf16> to vector<1x16x16x12xbf16>
    %10 = vector.extract_strided_slice %8 {offsets = [0, 1, 0, 0], sizes = [1, 16, 16, 12], strides = [1, 1, 1, 1]} : vector<1x18x16x12xbf16> to vector<1x16x16x12xbf16>
    %11 = vector.extract_strided_slice %8 {offsets = [0, 2, 0, 0], sizes = [1, 16, 16, 12], strides = [1, 1, 1, 1]} : vector<1x18x16x12xbf16> to vector<1x16x16x12xbf16>
    %12 = tpu.concatenate %9, %10, %11 in 3 : vector<1x16x16x12xbf16>, vector<1x16x16x12xbf16>, vector<1x16x16x12xbf16> -> vector<1x16x16x36xbf16>
    %13 = vector.shape_cast %12 : vector<1x16x16x36xbf16> to vector<256x36xbf16>
    %c0_14 = arith.constant 0 : index
    %c0_15 = arith.constant 0 : index
    %14 = vector.load %arg2[%c0_14, %c0_15] : memref<36x128xbf16, #tpu.memory_space<vmem>>, vector<36x128xbf16>
    %cst_16 = arith.constant dense<0.000000e+00> : vector<256x128xf32>
    %15 = tpu.matmul %13, %14, %cst_16 {dimension_numbers = #tpu.dot_dimension_numbers<[1], [0], [0], [1], [0, 0, 1, 1], [], []>} : vector<256x36xbf16>, vector<36x128xbf16>, vector<256x128xf32> -> vector<256x128xf32>
    %c0_17 = arith.constant 0 : index
    %c0_18 = arith.constant 0 : index
    %16 = vector.load %arg3[%c0_17, %c0_18] : memref<1x128xf32, #tpu.memory_space<vmem>>, vector<1x128xf32>
    %17 = vector.broadcast %16 : vector<1x128xf32> to vector<256x128xf32>
    %18 = arith.mulf %15, %17 : vector<256x128xf32>
    %c0_19 = arith.constant 0 : index
    %c0_20 = arith.constant 0 : index
    %19 = vector.load %arg4[%c0_19, %c0_20] : memref<1x128xf32, #tpu.memory_space<vmem>>, vector<1x128xf32>
    %20 = vector.broadcast %19 : vector<1x128xf32> to vector<256x128xf32>
    %21 = arith.addf %18, %20 : vector<256x128xf32>
    %22 = math.absf %21 : vector<256x128xf32>
    %cst_21 = arith.constant 0.000000e+00 : f32
    %23 = vector.broadcast %cst_21 : f32 to vector<256x128xf32>
    %24 = arith.subf %23, %22 : vector<256x128xf32>
    %25 = math.exp %24 : vector<256x128xf32>
    %cst_22 = arith.constant 1.000000e+00 : f32
    %26 = vector.broadcast %cst_22 : f32 to vector<256x128xf32>
    %27 = arith.addf %26, %25 : vector<256x128xf32>
    %28 = tpu.reciprocal %27 : vector<256x128xf32> -> vector<256x128xf32>
    %cst_23 = arith.constant 0.000000e+00 : f32
    %29 = vector.broadcast %cst_23 : f32 to vector<256x128xf32>
    %30 = arith.cmpf oge, %21, %29 : vector<256x128xf32>
    %31 = arith.mulf %25, %28 : vector<256x128xf32>
    %32 = arith.select %30, %28, %31 : vector<256x128xi1>, vector<256x128xf32>
    %33 = arith.mulf %21, %32 : vector<256x128xf32>
    %34 = vector.shape_cast %33 : vector<256x128xf32> to vector<1x256x128xf32>
    %c0_24 = arith.constant 0 : index
    %c0_25 = arith.constant 0 : index
    %c0_26 = arith.constant 0 : index
    %35 = vector.load %arg5[%c0_24, %c0_25, %c0_26] : memref<1x256x128xf32, #tpu.memory_space<vmem>>, vector<1x256x128xf32>
    tpu.vector_store %arg5[%c0_24, %c0_25, %c0_26], %34 {strides = array<i32>} : memref<1x256x128xf32, #tpu.memory_space<vmem>>, vector<1x256x128xf32>,
    return
  }
  func.func @transform_0(%arg0: i32) -> (i32, i32, i32, i32) {
    %c0_i32 = arith.constant 0 : i32
    %c0_i32_0 = arith.constant 0 : i32
    %c0_i32_1 = arith.constant 0 : i32
    %c0_i32_2 = arith.constant 0 : i32
    return %arg0, %c0_i32, %c0_i32_0, %c0_i32_1 : i32, i32, i32, i32
  }
  func.func @transform_1(%arg0: i32) -> (i32, i32) {
    %c0_i32 = arith.constant 0 : i32
    %c0_i32_0 = arith.constant 0 : i32
    %c0_i32_1 = arith.constant 0 : i32
    return %c0_i32, %c0_i32_0 : i32, i32
  }
  func.func @transform_2(%arg0: i32) -> (i32, i32) {
    %c0_i32 = arith.constant 0 : i32
    %c0_i32_0 = arith.constant 0 : i32
    %c0_i32_1 = arith.constant 0 : i32
    return %c0_i32, %c0_i32_0 : i32, i32
  }
  func.func @transform_3(%arg0: i32) -> (i32, i32) {
    %c0_i32 = arith.constant 0 : i32
    %c0_i32_0 = arith.constant 0 : i32
    %c0_i32_1 = arith.constant 0 : i32
    return %c0_i32, %c0_i32_0 : i32, i32
  }
  func.func @transform_4(%arg0: i32) -> (i32, i32, i32) {
    %c0_i32 = arith.constant 0 : i32
    %c0_i32_0 = arith.constant 0 : i32
    %c0_i32_1 = arith.constant 0 : i32
    return %arg0, %c0_i32, %c0_i32_0 : i32, i32, i32
  }
}

</mosaic_0001>

<bundles_post_ra>
// kernel: tpu_custom_call.1
= control target key start
LH: loop header
LB: loop body
LE: loop exit
PB: predicated region body
PF: predicated region fallthrough
CT: control target
= control target key end

     0   :  { %9 = vsyncpa [#allocation4], 0  ;;  %s4700_s0 = inlined_call_operand.vmem [shape: bf16[2,16,16,4], index: 0, kind: input, shape index: {}]   ;;  %s4701_s1 = inlined_call_operand.vmem [shape: bf16[36,128], index: 1, kind: input, shape index: {}]   ;;  %s4702_s2 = inlined_call_operand.vmem [shape: f32[1,128], index: 2, kind: input, shape index: {}]   ;;  %s4703_s3 = inlined_call_operand.vmem [shape: f32[1,128], index: 3, kind: input, shape index: {}]   ;;  %s4704_s4 = inlined_call_operand.hbm [shape: f32[2,256,128], index: 4, kind: output, shape index: {}]  }
   0x1   :  { %11 = vsyncpa [#allocation4 + $0x1], 0  ;;  %s2965_s15 = smov 0   ;;  %s2967_s16 = smov 0  }
   0x2   :  { %s2969_s17 = smov 0   ;;  %s2971_s18 = smov 0  }
   0x3 LB: > { %s2986_s19 = sadd.s32 4294967295, %s2932_s18   ;;  %s2553_s20 = sadd.s32 4294967294, %s2932_s18   ;;  %s2932_s18 = sphi %s2971_s18, %s4760_s18   ;;  %s2928_s17 = sphi %s2969_s17, %s4759_s17   ;;  %s2924_s16 = sphi %s2967_s16, %s4758_s16   ;;  %s2920_s15 = sphi %s2965_s15, %s4757_s15  }
   0x4   : > { %s2990_s21 = sadd.s32 1, %s2932_s18   ;;  %s113_s22 = sadd.s32 1, %s2928_s17 }
   0x5   : > { %s110_s23 = ssub.s32 %s2932_s18, %s2990_s21  ;;  %p123_p0 = scmp.ne.s32.totalorder %s2928_s17, %s2924_s16 }
   0x6   : > { %p111_p1 = scmp.eq.s32.totalorder %s110_s23, 0  ;;  %p124_p2 = scmp.eq.s32.totalorder %s2986_s19, 1 }
   0x7   : > { %p129_p3 = scmp.ne.s32.totalorder %s2924_s16, %s2920_s15  ;;  %p130_p4 = scmp.eq.s32.totalorder %s2553_s20, 1 }
   0x8   : > { %s3001_s24 = scalar_select %p111_p1, %s2928_s17, %s113_s22  }
   0x9   : > { %p3003_p5 = por %p124_p2, %p123_p0  ;;  %p3007_p6 = por %p130_p4, %p129_p3 }
   0xa   : > { %p2556_p7 = scmp.ge.s32.totalorder %s2932_s18, 1  ;;  %p165_p8 = scmp.lt.s32.totalorder %s2932_s18, 3 }
   0xc   : > { %p166_p9 = pnand %p2556_p7, %p165_p8 }
   0xd   : > { %p191_p10 = scmp.lt.s32.totalorder (!%p166_p9), %s2986_s19, 1  ;;  %s2935_s6 = smov (!%p166_p9), 8  }
   0xe   : > { %169 = sbr.rel (%p166_p9) target bundleno = 688 (0x2b0), region = 36  ;;  %s2936_s7 = smov (!%p166_p9), 4  }
   0xf   : > { %s2937_s8 = smov (!%p166_p9), 24   ;;  %s2938_s9 = smov (!%p166_p9), 12  }
  0x10   : > { %s188_s29 = sand.u32 (!%p166_p9), 1, %s2924_s16   ;;  %s2682_s11 = sshll.u32 (!%p166_p9), %s2986_s19, 8 }
  0x11   : > { %s3886_s30 = sshll.u32 (!%p166_p9), %s188_s29, 8  ;;  %s2487_s14 = scalar_lea.hbm (!%p166_p9), %s4704_s4, %s2682_s11 }
  0x12   : > { %s2490_s22 = sshll.u32 (!%p166_p9), %s2487_s14, 4  ;;  %s2491_s22 = int_to_ptr.hbm [resolvable:$true] %s2490_s22 }
  0x13   : > { %vm197_vm0 = vcmask 27648   ;;  %vm200_vm1 = vcmask 24576   ;;  %v2934_v0 = vmov 0   ;;  %s192_s27 = scalar_select %p191_p10, %s2986_s19, 1  ;;  %vm285_vm2 = vsmask.f32 256 }
  0x14   : > { %241 = vst.msk [vmem:[#allocation2 + $0xa8] sm:$0xf] %vm197_vm0, %v2934_v0  ;;  %vm286_vm3 = vsmask.f32 4368  ;;  %vm610_vm4 = vsmask.f32 7938  ;;  %vm3038_vm5 = vmand %vm200_vm1, %vm285_vm2 }
  0x15   : > { %242 = vst.msk [vmem:[#allocation2 + $0xac] sm:$0xf] %vm197_vm0, %v2934_v0  ;;  %s2661_s28 = sshll.u32 %s192_s27, 7  ;;  %vm3045_vm6 = vmor %vm285_vm2, %vm286_vm3  ;;  %vm1177_vm8 = vcmask 1046528   ;;  %vm924_vm9 = vsmask.f32 7424 }
  0x16   : > { %243 = vst.msk [vmem:[#allocation2 + $0xb0] sm:$0x1] %vm200_vm1, %v2934_v0  ;;  %s3026_s5 = scalar_lea.vmem %s4700_s0, %s2661_s28  ;;  %vm3053_vm7 = vmand %vm197_vm0, %vm610_vm4  ;;  %vm1268_vm10 = vcmask 31744   ;;  %vm1305_vm11 = vcmask 64512   ;;  %vm1542_vm12 = vcmask 1041408   ;;  %vm1423_vm13 = vcmask 97280  }
  0x17   : > { %198 = vst.msk [vmem:[#allocation2] sm:$0xf] %vm197_vm0, %v2934_v0  ;;  %v279_v1 = vld [vmem:[%s3026_s5 + $0x68] sm:$0xf]  ;;  %v280_v2 = vld [vmem:[%s3026_s5 + $0x6c] sm:$0xf] }
  0x18   : > { %199 = vst.msk [vmem:[#allocation2 + $0x4] sm:$0xf] %vm197_vm0, %v2934_v0  ;;  %v510_v3 = vshrl.u32 %v279_v1, 16  ;;  %v513_v4 = vshll.u32 %v279_v1, 16  ;;  %v518_v5 = vshrl.u32 %v280_v2, 16  ;;  %v521_v6 = vshll.u32 %v280_v2, 16 }
  0x19   : > { %201 = vst.msk [vmem:[#allocation2 + $0x8] sm:$0x1] %vm200_vm1, %v2934_v0  ;;  %v272_v28 = vld [vmem:[%s3026_s5 + $0x4c] sm:$0xf]  ;;  %v271_v29 = vld [vmem:[%s3026_s5 + $0x48] sm:$0xf] }
  0x1a   : > { %202 = vst.msk [vmem:[#allocation2 + $0xc] sm:$0xf] %vm197_vm0, %v2934_v0  ;;  %v512_v9 = vrot.slane %v510_v3, 7  ;;  %v520_v10 = vrot.slane %v518_v5, 7  ;;  %v3123_v30 = vld [vmem:[%s3026_s5 + $0x40] sm:$0xf] }
  0x1b   : > { %203 = vst.msk [vmem:[#allocation2 + $0x10] sm:$0xf] %vm197_vm0, %v2934_v0  ;;  %v705_v12 = vld [vmem:[#allocation2 + $0xa8] sm:$0xf]  ;;  %v270_v31 = vld [vmem:[%s3026_s5 + $0x44] sm:$0xf] }
  0x1c   : > { %204 = vst.msk [vmem:[#allocation2 + $0x14] sm:$0x1] %vm200_vm1, %v2934_v0  ;;  %v515_v14 = vor.u32 %v513_v4, %v512_v9  ;;  %v516_v15 = vrot.slane %v512_v9, 4  ;;  %v523_v16 = vor.u32 %v521_v6, %v520_v10  ;;  %v525_v17 = vrot.slane %v520_v10, 4  ;;  %v3134_v36 = vld [vmem:[%s3026_s5 + $0x64] sm:$0xf] }
  0x1d   : > { %v709_v13 = vld [vmem:[#allocation2 + $0xb0] sm:$0x1]  ;;  %205 = vst.msk [vmem:[#allocation2 + $0x18] sm:$0xf] %vm197_vm0, %v2934_v0  ;;  %v450_v32 = vshrl.u32 %v272_v28, 16  ;;  %v442_v33 = vshrl.u32 %v271_v29, 16 }
  0x1e   : > { %206 = vst.msk [vmem:[#allocation2 + $0x1c] sm:$0xf] %vm197_vm0, %v2934_v0  ;;  %v524_v18 = vsel %vm3045_vm6, %v516_v15, %v523_v16  ;;  %v706_v19 = vsel %vm3053_vm7, %v515_v14, %v705_v12  ;;  %v710_v20 = vsel %vm3038_vm5, %v525_v17, %v709_v13  ;;  %v425_v34 = vshrl.u32 %v3123_v30, 16  ;;  %v3143_v38 = vld [vmem:[%s3026_s5 + $0x60] sm:$0xf]  ;;  %s2476_s19 = scalar_lea.sflag [#allocation4], %s188_s29 }
  0x1f   : > { %207 = vst.msk [vmem:[#allocation2 + $0x20] sm:$0x1] %vm200_vm1, %v2934_v0  ;;  %v433_v35 = vshrl.u32 %v270_v31, 16  ;;  %v3140_v37 = vrot.slane %v450_v32, 7  ;;  %v444_v39 = vrot.slane %v442_v33, 7  ;;  %v501_v40 = vshrl.u32 %v3134_v36, 16 }
  0x20   : > { %208 = vst.msk [vmem:[#allocation2 + $0x24] sm:$0xf] %vm197_vm0, %v2934_v0  ;;  %v3149_v41 = vld [vmem:[%s3026_s5 + $0x24] sm:$0xf]  ;;  %v445_v42 = vshll.u32 %v271_v29, 16  ;;  %v453_v43 = vshll.u32 %v272_v28, 16 }
  0x21   : > { %707 = vst [vmem:[#allocation2 + $0xa8] sm:$0xf] %v706_v19  ;;  %v427_v44 = vrot.slane %v425_v34, 7  ;;  %v3153_v45 = vrot.slane %v433_v35, 7  ;;  %v436_v46 = vshll.u32 %v270_v31, 16  ;;  %v493_v47 = vshrl.u32 %v3143_v38, 16 }
  0x22   : > { %708 = vst.msk [vmem:[#allocation2 + $0xac] sm:$0xf] %vm197_vm0, %v524_v18  ;;  %v261_v48 = vld [vmem:[%s3026_s5 + $0x20] sm:$0xf]  ;;  %v365_v50 = vshrl.u32 %v3149_v41, 16  ;;  %v457_v52 = vrot.slane %v3140_v37, 4  ;;  %v455_v55 = vor.u32 %v453_v43, %v3140_v37  ;;  %v447_v62 = vor.u32 %v445_v42, %v444_v39 }
  0x23   : > { %711 = vst [vmem:[#allocation2 + $0xb0] sm:$0x1] %v710_v20  ;;  %v357_v49 = vshrl.u32 %v261_v48, 16  ;;  %v3163_v51 = vld [vmem:[%s3026_s5 + $0x8] sm:$0xf]  ;;  %v3168_v53 = vrot.slane %v501_v40, 7  ;;  %v438_v59 = vor.u32 %v436_v46, %v3153_v45 }
  0x24   : > { %209 = vst.msk [vmem:[#allocation2 + $0x28] sm:$0xf] %vm197_vm0, %v2934_v0  ;;  %v448_v54 = vrot.slane %v444_v39, 4  ;;  %v428_v56 = vshll.u32 %v3123_v30, 16  ;;  %v3175_v57 = vld [vmem:[%s3026_s5 + $0xc] sm:$0xf] }
  0x25   : > { %210 = vst.msk [vmem:[#allocation2 + $0x2c] sm:$0x1] %vm200_vm1, %v2934_v0  ;;  %v431_v58 = vrot.slane %v427_v44, 4  ;;  %v495_v60 = vrot.slane %v493_v47, 7  ;;  %v306_v61 = vshrl.u32 %v3163_v51, 16  ;;  %v440_v63 = vrot.slane %v3153_v45, 4 }
  0x26   : > { %211 = vst.msk [vmem:[#allocation2 + $0x30] sm:$0xf] %vm197_vm0, %v2934_v0  ;;  %v359_v1 = vrot.slane %v357_v49, 7  ;;  %v3184_v2 = vrot.slane %v365_v50, 7  ;;  %v496_v3 = vshll.u32 %v3143_v38, 16  ;;  %v504_v4 = vshll.u32 %v3134_v36, 16 }
  0x27   : > { %212 = vst.msk [vmem:[#allocation2 + $0x34] sm:$0xf] %vm197_vm0, %v2934_v0  ;;  %v508_v5 = vrot.slane %v3168_v53, 4  ;;  %v314_v6 = vshrl.u32 %v3175_v57, 16  ;;  %v456_v9 = vsel %vm3045_vm6, %v448_v54, %v455_v55  ;;  %v360_v13 = vshll.u32 %v261_v48, 16  ;;  %s2884_s23 = sshra.s32 %s2491_s22, 4  ;;  %s2885_s23 = int_to_ptr.hbm [resolvable:$true] %s2884_s23 }
  0x28   : > { %213 = vst.msk [vmem:[#allocation2 + $0x38] sm:$0x1] %vm200_vm1, %v2934_v0  ;;  %v368_v14 = vshll.u32 %v3149_v41, 16  ;;  %v430_v16 = vor.u32 %v428_v56, %v427_v44  ;;  %v439_v17 = vsel %vm3045_vm6, %v431_v58, %v438_v59  ;;  %v499_v18 = vrot.slane %v495_v60, 4  ;;  %v253_v37 = vld [vmem:[%s3026_s5] sm:$0xf]  ;;  %p2891_p0 = scmp.lt.s32.totalorder %s2885_s23, %s4704_s4 }
  0x29   : > { %v3082_v21 = vld [vmem:[#allocation2 + $0xa8] sm:$0xff]  ;;  %214 = vst.msk [vmem:[#allocation2 + $0x3c] sm:$0xf] %vm197_vm0, %v2934_v0  ;;  %v3201_v19 = vrot.slane %v306_v61, 7  ;;  %v506_v28 = vor.u32 %v504_v4, %v3168_v53  ;;  %v3215_v30 = vrot.slane %v314_v6, 7  ;;  %v317_v31 = vshll.u32 %v3175_v57, 16 }
  0x2a   : > { %v770_v22 = vld [vmem:[#allocation2 + $0xb0] sm:$0x1]  ;;  %215 = vst.msk [vmem:[#allocation2 + $0x40] sm:$0xf] %vm197_vm0, %v2934_v0  ;;  %v1220_v25 = vrot.slane %v3082_v21, 1  ;;  %v1094_v32 = vshrl.u32 %v3082_v21, 16  ;;  %v3222_v34 = vor.u32 %v360_v13, %v359_v1  ;;  %v370_v35 = vor.u32 %v368_v14, %v3184_v2 }
  0x2b   : > { %v902_v23 = vunpack.c.l.b16 %v770_v22  ;;  %216 = vst.msk [vmem:[#allocation2 + $0x44] sm:$0x1] %vm200_vm1, %v2934_v0  ;;  %v1096_v22 = vshll.u32 %v3082_v21, 16  ;;  %v498_v39 = vor.u32 %v496_v3, %v495_v60  ;;  %v312_v40 = vrot.slane %v3201_v19, 4  ;;  %v3231_v41 = vld [vmem:[#allocation2 + $0x18] sm:$0xf] }
  0x2c   : > { %217 = vst.msk [vmem:[#allocation2 + $0x48] sm:$0xf] %vm197_vm0, %v2934_v0  ;;  %v254_v42 = vld [vmem:[%s3026_s5 + $0x4] sm:$0xf]  ;;  %v289_v43 = vshrl.u32 %v253_v37, 16  ;;  %v507_v49 = vsel %vm3045_vm6, %v499_v18, %v506_v28  ;;  %v319_v60 = vor.u32 %v317_v31, %v3215_v30  ;;  %vm1456_vm14 = vcmask 195584  }
  0x2d   : > { %v3092_v24 = vpack.c.b16 %v902_v23, %v902_v23  ;;  %218 = vst.msk [vmem:[#allocation2 + $0x4c] sm:$0xf] %vm197_vm0, %v2934_v0  ;;  %v363_v23 = vrot.slane %v359_v1, 4  ;;  %v1098_v44 = vrot.slane %v1096_v22, 1  ;;  %v297_v47 = vshrl.u32 %v254_v42, 16  ;;  %s2886_s27 = scalar_lea.hbm %s2885_s23, 256 }
  0x2e   : > { %219 = vst.msk [vmem:[#allocation2 + $0x50] sm:$0x1] %vm200_vm1, %v2934_v0  ;;  %v300_v56 = vshll.u32 %v254_v42, 16  ;;  %v264_v57 = vld [vmem:[%s3026_s5 + $0x2c] sm:$0xf]  ;;  %v321_v1 = vrot.slane %v3215_v30, 4  ;;  %p2887_p11 = scmp.ne.s32.totalorder %s2885_s23, %s2886_s27 }
  0x2f   : > { %v1221_v26 = vrot.slane %v3092_v24, 1  ;;  %220 = vst.msk [vmem:[#allocation2 + $0x54] sm:$0xf] %vm197_vm0, %v2934_v0  ;;  %v1101_v33 = vshll.u32 %v3092_v24, 16  ;;  %v299_v55 = vrot.slane %v297_v47, 7  ;;  %vm1509_vm15 = vcmask 293888  }
  0x30   : > { %221 = vst.msk [vmem:[#allocation2 + $0x58] sm:$0xf] %vm197_vm0, %v2934_v0  ;;  %v3213_v29 = vld [vmem:[#allocation2 + $0x3c] sm:$0xf]  ;;  %v263_v61 = vld [vmem:[%s3026_s5 + $0x28] sm:$0xf]  ;;  %p2888_p12 = pnand %p2887_p11, %p3003_p5 }
  0x31   : > { %v1222_v27 = vsel %vm1177_vm8, %v1220_v25, %v1221_v26  ;;  %222 = vst.msk [vmem:[#allocation2 + $0x5c] sm:$0x1] %vm200_vm1, %v2934_v0  ;;  %v372_v25 = vrot.slane %v3184_v2, 4  ;;  %v309_v26 = vshll.u32 %v3163_v51, 16  ;;  %v292_v51 = vshll.u32 %v253_v37, 16 }
  0x32   : > { %1260 = vrot.lane.b32.xlu1 %v1222_v27, %s2935_s6  ;;  %223 = vst.msk [vmem:[#allocation2 + $0x60] sm:$0xf] %vm197_vm0, %v2934_v0  ;;  %v646_v36 = vld [vmem:[#allocation2 + $0x44] sm:$0x1]  ;;  %v643_v54 = vsel %vm3053_vm7, %v3222_v34, %v3213_v29  ;;  %v3253_v58 = vrot.slane %v1101_v33, 1  ;;  %v374_v4 = vshrl.u32 %v263_v61, 16  ;;  %v302_v18 = vor.u32 %v300_v56, %v299_v55  ;;  %p2889_p13 = pneg %p2888_p12 }
  0x33   : > { %224 = vst.msk [vmem:[#allocation2 + $0x64] sm:$0xf] %vm197_vm0, %v2934_v0  ;;  %v3239_v46 = vor.u32 %v309_v26, %v3201_v19  ;;  %v647_v59 = vsel %vm3038_vm5, %v372_v25, %v646_v36  ;;  %v625_v3 = vld [vmem:[#allocation2 + $0x20] sm:$0x1]  ;;  %v273_v6 = vld [vmem:[%s3026_s5 + $0x50] sm:$0xf]  ;;  %v320_v33 = vsel %vm3045_vm6, %v312_v40, %v319_v60 }
  0x34   : > { %225 = vst.msk [vmem:[#allocation2 + $0x68] sm:$0x1] %vm200_vm1, %v2934_v0  ;;  %v274_v14 = vld [vmem:[%s3026_s5 + $0x54] sm:$0xf]  ;;  %v376_v22 = vrot.slane %v374_v4, 7  ;;  %v385_v25 = vshll.u32 %v264_v57, 16  ;;  %v626_v21 = vsel %vm3038_vm5, %v321_v1, %v625_v3 }
  0x35   : > { %226 = vst.msk [vmem:[#allocation2 + $0x6c] sm:$0xf] %vm197_vm0, %v2934_v0  ;;  %v622_v2 = vsel %vm3053_vm7, %v3239_v46, %v3231_v41  ;;  %v653_v28 = vld [vmem:[#allocation2 + $0x50] sm:$0x1]  ;;  %v462_v29 = vshll.u32 %v273_v6, 16  ;;  %v467_v30 = vshrl.u32 %v274_v14, 16 }
  0x36   : > { %227 = vst.msk [vmem:[#allocation2 + $0x70] sm:$0xf] %vm197_vm0, %v2934_v0 }
  0x37   : > { %228 = vst.msk [vmem:[#allocation2 + $0x74] sm:$0x1] %vm200_vm1, %v2934_v0  ;;  %v3300_v19 = vrot.slane %v467_v30, 7 }
  0x38   : > { %229 = vst.msk [vmem:[#allocation2 + $0x78] sm:$0xf] %vm197_vm0, %v2934_v0 }
  0x39   : > { %230 = vst.msk [vmem:[#allocation2 + $0x7c] sm:$0xf] %vm197_vm0, %v2934_v0 }
  0x3a   : > { %231 = vst.msk [vmem:[#allocation2 + $0x80] sm:$0x1] %vm200_vm1, %v2934_v0 }
  0x3b   : > { %232 = vst.msk [vmem:[#allocation2 + $0x84] sm:$0xf] %vm197_vm0, %v2934_v0 }
  0x3c   : > { %233 = vst.msk [vmem:[#allocation2 + $0x88] sm:$0xf] %vm197_vm0, %v2934_v0  ;;  %v670_v12 = vld [vmem:[#allocation2 + $0x6c] sm:$0xf] }
  0x3d   : > { %234 = vst.msk [vmem:[#allocation2 + $0x8c] sm:$0x1] %vm200_vm1, %v2934_v0  ;;  %v671_v38 = vsel %vm3053_vm7, %v430_v16, %v670_v12  ;;  %v3274_v12 = vld [vmem:[#allocation2 + $0xc] sm:$0xf] }
  0x3e   : > { %235 = vst.msk [vmem:[#allocation2 + $0x90] sm:$0xf] %vm197_vm0, %v2934_v0  ;;  %v674_v20 = vld [vmem:[#allocation2 + $0x74] sm:$0x1] }
  0x3f   : > { %236 = vst.msk [vmem:[#allocation2 + $0x94] sm:$0xf] %vm197_vm0, %v2934_v0  ;;  %v677_v10 = vld [vmem:[#allocation2 + $0x78] sm:$0xf]  ;;  %v675_v48 = vsel %vm3038_vm5, %v440_v63, %v674_v20  ;;  %v618_v20 = vld [vmem:[#allocation2 + $0x14] sm:$0x1] }
  0x40   : > { %237 = vst.msk [vmem:[#allocation2 + $0x98] sm:$0x1] %vm200_vm1, %v2934_v0  ;;  %v678_v27 = vsel %vm3053_vm7, %v447_v62, %v677_v10  ;;  %v382_v62 = vshrl.u32 %v264_v57, 16 }
  0x41   : > { %238 = vst.msk [vmem:[#allocation2 + $0x9c] sm:$0xf] %vm197_vm0, %v2934_v0  ;;  %v681_v15 = vld [vmem:[#allocation2 + $0x80] sm:$0x1] }
  0x42   : > { %239 = vst.msk [vmem:[#allocation2 + $0xa0] sm:$0xf] %vm197_vm0, %v2934_v0  ;;  %v682_v24 = vsel %vm3038_vm5, %v457_v52, %v681_v15  ;;  %v371_v52 = vsel %vm3045_vm6, %v363_v23, %v370_v35  ;;  %v384_v13 = vrot.slane %v382_v62, 7  ;;  %v459_v15 = vshrl.u32 %v273_v6, 16  ;;  %v649_v35 = vld [vmem:[#allocation2 + $0x48] sm:$0xf] }
  0x43   : > { %240 = vst.msk [vmem:[#allocation2 + $0xa4] sm:$0x1] %vm200_vm1, %v2934_v0  ;;  %v377_v23 = vshll.u32 %v263_v61, 16 }
  0x44   : > { %244 = vst.msk [vmem:[#allocation2 + $0xb4] sm:$0xf] %vm197_vm0, %v2934_v0  ;;  %v389_v53 = vrot.slane %v384_v13, 4  ;;  %v3277_v26 = vrot.slane %v459_v15, 7  ;;  %v387_v34 = vor.u32 %v385_v25, %v384_v13 }
  0x45   : > { %245 = vst.msk [vmem:[#allocation2 + $0xb8] sm:$0xf] %vm197_vm0, %v2934_v0 }
  0x46   : > { %246 = vst.msk [vmem:[#allocation2 + $0xbc] sm:$0x1] %vm200_vm1, %v2934_v0  ;;  %v3317_v46 = vor.u32 %v462_v29, %v3277_v26  ;;  %v465_v47 = vrot.slane %v3277_v26, 4 }
  0x47   : > { %247 = vst.msk [vmem:[#allocation2 + $0xc0] sm:$0xf] %vm197_vm0, %v2934_v0 }
  0x48   : > { %248 = vst.msk [vmem:[#allocation2 + $0xc4] sm:$0xf] %vm197_vm0, %v2934_v0  ;;  %v698_v45 = vld [vmem:[#allocation2 + $0x9c] sm:$0xf] }
  0x49   : > { %249 = vst.msk [vmem:[#allocation2 + $0xc8] sm:$0x1] %vm200_vm1, %v2934_v0  ;;  %v699_v63 = vsel %vm3053_vm7, %v498_v39, %v698_v45  ;;  %v470_v39 = vshll.u32 %v274_v14, 16  ;;  %v3314_v45 = vsel %vm3038_vm5, %v389_v53, %v653_v28  ;;  %v688_v14 = vld [vmem:[#allocation2 + $0x8c] sm:$0x1] }
  0x4a   : > { %250 = vst.msk [vmem:[#allocation2 + $0xcc] sm:$0xf] %vm197_vm0, %v2934_v0  ;;  %v702_v50 = vld [vmem:[#allocation2 + $0xa4] sm:$0x1] }
  0x4b   : > { %251 = vst.msk [vmem:[#allocation2 + $0xd0] sm:$0xf] %vm197_vm0, %v2934_v0  ;;  %v472_v57 = vor.u32 %v470_v39, %v3300_v19 }
  0x4c   : > { %252 = vst.msk [vmem:[#allocation2 + $0xd4] sm:$0x1] %vm200_vm1, %v2934_v0  ;;  %v291_v0 = vrot.slane %v289_v43, 7 }
  0x4d   : > { %679 = vst [vmem:[#allocation2 + $0x78] sm:$0xf] %v678_v27  ;;  %v3284_v27 = vor.u32 %v377_v23, %v376_v22  ;;  %v473_v26 = vsel %vm3045_vm6, %v465_v47, %v472_v57 }
  0x4e   : > { %680 = vst.msk [vmem:[#allocation2 + $0x7c] sm:$0xf] %vm197_vm0, %v456_v9  ;;  %v703_v9 = vsel %vm3038_vm5, %v508_v5, %v702_v50  ;;  %v3272_v10 = vor.u32 %v292_v51, %v291_v0  ;;  %v295_v16 = vrot.slane %v291_v0, 4  ;;  %v3281_v5 = vor.u32 %v1098_v44, %v1094_v32 }
  0x4f   : > { %683 = vst [vmem:[#allocation2 + $0x80] sm:$0x1] %v682_v24  ;;  %v380_v32 = vrot.slane %v376_v22, 4  ;;  %v650_v44 = vsel %vm3053_vm7, %v3284_v27, %v649_v35 }
  0x50   : > { %672 = vst [vmem:[#allocation2 + $0x6c] sm:$0xf] %v671_v38  ;;  %v303_v37 = vsel %vm3045_vm6, %v295_v16, %v302_v18  ;;  %v613_v38 = vsel %vm3053_vm7, %v3272_v10, %v3274_v12 }
  0x51   : > { %673 = vst.msk [vmem:[#allocation2 + $0x70] sm:$0xf] %vm197_vm0, %v439_v17  ;;  %v304_v17 = vrot.slane %v299_v55, 4 }
  0x52   : > { %676 = vst [vmem:[#allocation2 + $0x74] sm:$0x1] %v675_v48  ;;  %v3320_v48 = vld [vmem:[#allocation2 + $0x84] sm:$0xf] }
  0x53   : > { %700 = vst [vmem:[#allocation2 + $0x9c] sm:$0xf] %v699_v63  ;;  %v619_v43 = vsel %vm3038_vm5, %v304_v17, %v618_v20  ;;  %v474_v63 = vrot.slane %v3300_v19, 4  ;;  %v685_v6 = vsel %vm3053_vm7, %v3317_v46, %v3320_v48 }
  0x54   : > { %701 = vst.msk [vmem:[#allocation2 + $0xa0] sm:$0xf] %vm197_vm0, %v507_v49 }
  0x55   : > { %v3286_v31 = vld [vmem:[#allocation2 + $0x78] sm:$0xff]  ;;  %704 = vst [vmem:[#allocation2 + $0xa4] sm:$0x1] %v703_v9  ;;  %v689_v35 = vsel %vm3038_vm5, %v474_v63, %v688_v14 }
  0x56   : > { %v758_v36 = vld [vmem:[#allocation2 + $0x80] sm:$0x1]  ;;  %644 = vst [vmem:[#allocation2 + $0x3c] sm:$0xf] %v643_v54  ;;  %v1046_v41 = vshrl.u32 %v3286_v31, 16  ;;  %v1048_v42 = vshll.u32 %v3286_v31, 16 }
  0x57   : > { %v898_v40 = vunpack.c.l.b16 %v758_v36  ;;  %645 = vst.msk [vmem:[#allocation2 + $0x40] sm:$0xf] %vm197_vm0, %v371_v52  ;;  %v1208_v50 = vrot.slane %v3286_v31, 1  ;;  %v388_v52 = vsel %vm3045_vm6, %v380_v32, %v387_v34 }
  0x58   : > { %v3307_v24 = vld [vmem:[#allocation2 + $0x6c] sm:$0xff]  ;;  %648 = vst [vmem:[#allocation2 + $0x44] sm:$0x1] %v647_v59  ;;  %v1050_v0 = vrot.slane %v1048_v42, 1 }
  0x59   : > { %v916_v49 = vpack.c.b16 %v898_v40, %v898_v40  ;;  %v755_v51 = vld [vmem:[#allocation2 + $0x74] sm:$0x1]  ;;  %623 = vst [vmem:[#allocation2 + $0x18] sm:$0xf] %v622_v2  ;;  %v1034_v55 = vshrl.u32 %v3307_v24, 16  ;;  %v1036_v56 = vshll.u32 %v3307_v24, 16 }
  0x5a   : > { %v897_v54 = vunpack.c.l.b16 %v755_v51  ;;  %624 = vst.msk [vmem:[#allocation2 + $0x1c] sm:$0xf] %vm197_vm0, %v320_v33  ;;  %v1051_v60 = vor.u32 %v1050_v0, %v1046_v41  ;;  %v1205_v4 = vrot.slane %v3307_v24, 1 }
  0x5b   : > { %v1209_v59 = vrot.slane %v916_v49, 1  ;;  %v1053_v61 = vshll.u32 %v916_v49, 16  ;;  %v3329_v62 = vld [vmem:[#allocation2 + $0x9c] sm:$0xff]  ;;  %627 = vst [vmem:[#allocation2 + $0x20] sm:$0x1] %v626_v21  ;;  %v1038_v2 = vrot.slane %v1036_v56, 1 }
  0x5c   : > { %v915_v1 = vpack.c.b16 %v897_v54, %v897_v54  ;;  %v767_v3 = vld [vmem:[#allocation2 + $0xa4] sm:$0x1]  ;;  %614 = vst [vmem:[#allocation2 + $0xc] sm:$0xf] %v613_v38  ;;  %v1082_v13 = vshrl.u32 %v3329_v62, 16  ;;  %v1084_v18 = vshll.u32 %v3329_v62, 16 }
  0x5d   : > { %v1210_v9 = vsel %vm1177_vm8, %v1208_v50, %v1209_v59  ;;  %v1055_v10 = vrot.slane %v1053_v61, 1  ;;  %v901_v12 = vunpack.c.l.b16 %v767_v3  ;;  %615 = vst.msk [vmem:[#allocation2 + $0x10] sm:$0xf] %vm197_vm0, %v303_v37  ;;  %v1039_v15 = vor.u32 %v1038_v2, %v1034_v55 }
  0x5e   : > { %1252 = vrot.lane.b32.xlu0 %v1210_v9, %s2935_s6  ;;  %v1041_v16 = vshll.u32 %v915_v1, 16  ;;  %v1206_v20 = vrot.slane %v915_v1, 1  ;;  %v3342_v22 = vld [vmem:[#allocation2 + $0x3c] sm:$0xff]  ;;  %620 = vst [vmem:[#allocation2 + $0x14] sm:$0x1] %v619_v43  ;;  %v1217_v53 = vrot.slane %v3329_v62, 1  ;;  %v1104_v50 = vsel %vm924_vm9, %v3281_v5, %v3253_v58 }
  0x5f   : > { %v1056_v23 = vsel %vm924_vm9, %v1051_v60, %v1055_v10  ;;  %v919_v17 = vpack.c.b16 %v901_v12, %v901_v12  ;;  %v743_v25 = vld [vmem:[#allocation2 + $0x44] sm:$0x1]  ;;  %651 = vst [vmem:[#allocation2 + $0x48] sm:$0xf] %v650_v44  ;;  %v1086_v28 = vrot.slane %v1084_v18, 1  ;;  %v986_v21 = vshrl.u32 %v3342_v22, 16 }
  0x60   : > { %1161 = vrot.lane.b32.xlu1 %v1056_v23, %s2936_s7  ;;  %v1043_v27 = vrot.slane %v1041_v16, 1  ;;  %v1207_v29 = vsel %vm1177_vm8, %v1205_v4, %v1206_v20  ;;  %v893_v30 = vunpack.c.l.b16 %v743_v25  ;;  %652 = vst.msk [vmem:[#allocation2 + $0x4c] sm:$0xf] %vm197_vm0, %v388_v52  ;;  %v988_v32 = vshll.u32 %v3342_v22, 16  ;;  %v281_v44 = vld [vmem:[%s3026_s5 + $0x70] sm:$0xf] }
  0x61   : > { %v1089_v33 = vshll.u32 %v919_v17, 16  ;;  %1250 = vrot.lane.b32.xlu2 %v1207_v29, %s2935_s6  ;;  %v3354_v34 = vld [vmem:[#allocation2 + $0x18] sm:$0xff]  ;;  %v1087_v37 = vor.u32 %v1086_v28, %v1082_v13  ;;  %v1218_v39 = vrot.slane %v919_v17, 1  ;;  %655 = vst [vmem:[#allocation2 + $0x50] sm:$0x1] %v3314_v45  ;;  %v1193_v43 = vrot.slane %v3342_v22, 1 }
  0x62   : > { %v1044_v36 = vsel %vm924_vm9, %v1039_v15, %v1043_v27  ;;  %v911_v38 = vpack.c.b16 %v893_v30, %v893_v30  ;;  %v734_v19 = vld [vmem:[#allocation2 + $0x20] sm:$0x1]  ;;  %v990_v41 = vrot.slane %v988_v32, 1  ;;  %686 = vst [vmem:[#allocation2 + $0x84] sm:$0xf] %v685_v6  ;;  %v952_v47 = vshll.u32 %v3354_v34, 16 }
  0x63   : > { %v1091_v40 = vrot.slane %v1089_v33, 1  ;;  %v890_v42 = vunpack.c.l.b16 %v734_v19  ;;  %687 = vst.msk [vmem:[#allocation2 + $0x88] sm:$0xf] %vm197_vm0, %v473_v26  ;;  %v950_v0 = vshrl.u32 %v3354_v34, 16  ;;  %v1219_v55 = vsel %vm1177_vm8, %v1217_v53, %v1218_v39  ;;  %v282_v32 = vld [vmem:[%s3026_s5 + $0x74] sm:$0xf] }
  0x64   : > { %v993_v46 = vshll.u32 %v911_v38, 16  ;;  %v1194_v48 = vrot.slane %v911_v38, 1  ;;  %v3363_v49 = vld [vmem:[#allocation2 + $0xc] sm:$0xff]  ;;  %690 = vst [vmem:[#allocation2 + $0x8c] sm:$0x1] %v689_v35  ;;  %v954_v54 = vrot.slane %v952_v47, 1  ;;  %v991_v57 = vor.u32 %v990_v41, %v986_v21 }
  0x65   : > { %v3369_v45 = vpack.c.b16 %v890_v42, %v890_v42  ;;  %v731_v51 = vld [vmem:[#allocation2 + $0x14] sm:$0x1]  ;;  %v1092_v52 = vsel %vm924_vm9, %v1087_v37, %v1091_v40  ;;  %v938_v60 = vshrl.u32 %v3363_v49, 16  ;;  %v940_v58 = vshll.u32 %v3363_v49, 16 }
  0x66   : > { %1159 = vrot.lane.b32.xlu0 %v1044_v36, %s2936_s7  ;;  %v889_v56 = vunpack.c.l.b16 %v731_v51  ;;  %v995_v61 = vrot.slane %v993_v46, 1  ;;  %v3382_v63 = vsel %vm1177_vm8, %v1193_v43, %v1194_v48  ;;  %v527_v2 = vshrl.u32 %v281_v44, 16  ;;  %v712_v19 = vld [vmem:[#allocation2 + $0xb4] sm:$0xf]  ;;  %v265_v48 = vld [vmem:[%s3026_s5 + $0x30] sm:$0xf] }
  0x67   : > { %v957_v59 = vshll.u32 %v3369_v45, 16  ;;  %v3378_v5 = vld [vmem:[#allocation2 + $0x48] sm:$0xff]  ;;  %v955_v3 = vor.u32 %v954_v54, %v950_v0  ;;  %v1181_v6 = vrot.slane %v3363_v49, 1  ;;  %v942_v9 = vrot.slane %v940_v58, 1  ;;  %v266_v54 = vld [vmem:[%s3026_s5 + $0x34] sm:$0xf] }
  0x68   : > { %1169 = vrot.lane.b32.xlu1 %v1104_v50, %s2936_s7  ;;  %v907_v1 = vpack.c.b16 %v889_v56, %v889_v56  ;;  %v746_v10 = vld [vmem:[#allocation2 + $0x50] sm:$0x1]  ;;  %v1000_v15 = vshll.u32 %v3378_v5, 16  ;;  %v998_v20 = vshrl.u32 %v3378_v5, 16  ;;  %v529_v23 = vrot.slane %v527_v2, 7 }
  0x69   : > { %v959_v4 = vrot.slane %v957_v59, 1  ;;  %1258 = vrot.lane.b32.xlu2 %v1219_v55, %s2935_s6  ;;  %v894_v14 = vunpack.c.l.b16 %v746_v10  ;;  %v943_v16 = vor.u32 %v942_v9, %v938_v60  ;;  %v530_v17 = vshll.u32 %v281_v44, 16  ;;  %v257_v55 = vld [vmem:[%s3026_s5 + $0x10] sm:$0xf] }
  0x6a   : > { %v1182_v12 = vrot.slane %v907_v1, 1  ;;  %v945_v13 = vshll.u32 %v907_v1, 16  ;;  %v3387_v18 = vld [vmem:[#allocation2 + $0x84] sm:$0xff]  ;;  %v996_v25 = vsel %vm924_vm9, %v991_v57, %v995_v61  ;;  %v1002_v28 = vrot.slane %v1000_v15, 1  ;;  %v716_v1 = vld [vmem:[#allocation2 + $0xbc] sm:$0x1] }
  0x6b   : > { %v3391_v26 = vpack.c.b16 %v894_v14, %v894_v14  ;;  %v761_v27 = vld [vmem:[#allocation2 + $0x8c] sm:$0x1]  ;;  %v960_v29 = vsel %vm924_vm9, %v955_v3, %v959_v4  ;;  %v1058_v33 = vshrl.u32 %v3387_v18, 16  ;;  %v1060_v21 = vshll.u32 %v3387_v18, 16 }
  0x6c   : > { %v947_v53 = vrot.slane %v945_v13, 1  ;;  %v899_v30 = vunpack.c.l.b16 %v761_v27  ;;  %v3399_v35 = vsel %vm1177_vm8, %v1181_v6, %v1182_v12  ;;  %v1196_v37 = vrot.slane %v3378_v5, 1  ;;  %v656_v12 = vld [vmem:[#allocation2 + $0x54] sm:$0xf] }
  0x6d   : > { %v1005_v38 = vshll.u32 %v3391_v26, 16  ;;  %v1062_v40 = vrot.slane %v1060_v21, 1  ;;  %v1003_v41 = vor.u32 %v1002_v28, %v998_v20  ;;  %v532_v42 = vor.u32 %v530_v17, %v529_v23  ;;  %v258_v13 = vld [vmem:[%s3026_s5 + $0x14] sm:$0xf] }
  0x6e   : > { %1167 = vrot.lane.b32.xlu0 %v1092_v52, %s2936_s7  ;;  %v948_v36 = vsel %vm924_vm9, %v943_v16, %v947_v53  ;;  %v3404_v39 = vpack.c.b16 %v899_v30, %v899_v30  ;;  %v1211_v44 = vrot.slane %v3387_v18, 1  ;;  %v535_v46 = vshrl.u32 %v282_v32, 16  ;;  %v660_v16 = vld [vmem:[#allocation2 + $0x5c] sm:$0x1] }
  0x6f   : > { %v1007_v43 = vrot.slane %v1005_v38, 1  ;;  %v538_v47 = vshll.u32 %v282_v32, 16  ;;  %v1197_v50 = vrot.slane %v3391_v26, 1  ;;  %v1063_v0 = vor.u32 %v1062_v40, %v1058_v33  ;;  %v276_v30 = vld [vmem:[%s3026_s5 + $0x5c] sm:$0xf] }
  0x70   : > { %1145 = vrot.lane.b32.xlu1 %v960_v29, %s2936_s7  ;;  %v1065_v51 = vshll.u32 %v3404_v39, 16  ;;  %v713_v52 = vsel %vm3053_vm7, %v532_v42, %v712_v19  ;;  %v533_v56 = vrot.slane %v529_v23, 4  ;;  %v537_v57 = vrot.slane %v535_v46, 7  ;;  %v275_v23 = vld [vmem:[%s3026_s5 + $0x58] sm:$0xf] }
  0x71   : > { %1143 = vrot.lane.b32.xlu2 %v948_v36, %s2936_s7  ;;  %714 = vst [vmem:[#allocation2 + $0xb4] sm:$0xf] %v713_v52  ;;  %v1184_v59 = vrot.slane %v3354_v34, 1  ;;  %v1185_v60 = vrot.slane %v3369_v45, 1  ;;  %v1008_v61 = vsel %vm924_vm9, %v1003_v41, %v1007_v43  ;;  %v391_v2 = vshrl.u32 %v265_v48, 16 }
  0x72   : > { %v1067_v58 = vrot.slane %v1065_v51, 1  ;;  %v394_v3 = vshll.u32 %v265_v48, 16  ;;  %v540_v4 = vor.u32 %v538_v47, %v537_v57  ;;  %v542_v6 = vrot.slane %v537_v57, 4  ;;  %v628_v29 = vld [vmem:[#allocation2 + $0x24] sm:$0xf] }
  0x73   : > { %v3420_v9 = vsel %vm1177_vm8, %v1184_v59, %v1185_v60  ;;  %v399_v10 = vshrl.u32 %v266_v54, 16  ;;  %v393_v45 = vrot.slane %v391_v2, 7  ;;  %v402_v15 = vshll.u32 %v266_v54, 16  ;;  %v632_v40 = vld [vmem:[#allocation2 + $0x2c] sm:$0x1] }
  0x74   : > { %v3424_v14 = vsel %vm924_vm9, %v1063_v0, %v1067_v58  ;;  %v323_v20 = vshrl.u32 %v257_v55, 16  ;;  %v541_v17 = vsel %vm3045_vm6, %v533_v56, %v540_v4  ;;  %v717_v53 = vsel %vm3038_vm5, %v542_v6, %v716_v1  ;;  %v691_v48 = vld [vmem:[#allocation2 + $0x90] sm:$0xf]  ;;  %v283_v0 = vld [vmem:[%s3026_s5 + $0x78] sm:$0xf] }
  0x75   : > { %v401_v27 = vrot.slane %v399_v10, 7  ;;  %v326_v28 = vshll.u32 %v257_v55, 16  ;;  %715 = vst.msk [vmem:[#allocation2 + $0xb8] sm:$0xf] %vm197_vm0, %v541_v17  ;;  %v396_v33 = vor.u32 %v394_v3, %v393_v45  ;;  %v397_v21 = vrot.slane %v393_v45, 4 }
  0x76   : > { %1151 = vrot.lane.b32.xlu0 %v996_v25, %s2936_s7  ;;  %v325_v32 = vrot.slane %v323_v20, 7  ;;  %v331_v36 = vshrl.u32 %v258_v13, 16  ;;  %718 = vst [vmem:[#allocation2 + $0xbc] sm:$0x1] %v717_v53  ;;  %v334_v19 = vshll.u32 %v258_v13, 16  ;;  %v476_v41 = vshrl.u32 %v275_v23, 16 }
  0x77   : > { %v404_v25 = vor.u32 %v402_v15, %v401_v27  ;;  %v406_v38 = vrot.slane %v401_v27, 4  ;;  %v657_v42 = vsel %vm3053_vm7, %v396_v33, %v656_v12  ;;  %v479_v54 = vshll.u32 %v275_v23, 16  ;;  %v284_v55 = vld [vmem:[%s3026_s5 + $0x7c] sm:$0xf]  ;;  %v3449_v58 = vld [vmem:[%s3026_s5 + $0x18] sm:$0xf] }
  0x78   : > { %1242 = vrot.lane.b32.xlu1 %v3382_v63, %s2935_s6  ;;  %v328_v43 = vor.u32 %v326_v28, %v325_v32  ;;  %v329_v46 = vrot.slane %v325_v32, 4  ;;  %v333_v47 = vrot.slane %v331_v36, 7  ;;  %658 = vst [vmem:[#allocation2 + $0x54] sm:$0xf] %v657_v42  ;;  %v478_v52 = vrot.slane %v476_v41, 7 }
  0x79   : > { %1153 = vrot.lane.b32.xlu2 %v1008_v61, %s2936_s7  ;;  %v405_v63 = vsel %vm3045_vm6, %v397_v21, %v404_v25  ;;  %v661_v51 = vsel %vm3038_vm5, %v406_v38, %v660_v16  ;;  %v484_v60 = vshrl.u32 %v276_v30, 16  ;;  %v487_v2 = vshll.u32 %v276_v30, 16  ;;  %v695_v3 = vld [vmem:[#allocation2 + $0x98] sm:$0x1]  ;;  %v719_v45 = vld [vmem:[#allocation2 + $0xc0] sm:$0xf] }
  0x7a   : > { %659 = vst.msk [vmem:[#allocation2 + $0x58] sm:$0xf] %vm197_vm0, %v405_v63  ;;  %v336_v56 = vor.u32 %v334_v19, %v333_v47  ;;  %v338_v57 = vrot.slane %v333_v47, 4  ;;  %v629_v59 = vsel %vm3053_vm7, %v328_v43, %v628_v29  ;;  %v481_v61 = vor.u32 %v479_v54, %v478_v52  ;;  %v723_v38 = vld [vmem:[#allocation2 + $0xc8] sm:$0x1] }
  0x7b   : > { %662 = vst [vmem:[#allocation2 + $0x5c] sm:$0x1] %v661_v51  ;;  %v482_v1 = vrot.slane %v478_v52, 4  ;;  %v544_v4 = vshrl.u32 %v283_v0, 16  ;;  %v486_v12 = vrot.slane %v484_v60, 7  ;;  %v547_v13 = vshll.u32 %v283_v0, 16 }
  0x7c   : > { %v337_v6 = vsel %vm3045_vm6, %v329_v46, %v336_v56  ;;  %630 = vst [vmem:[#allocation2 + $0x24] sm:$0xf] %v629_v59  ;;  %v633_v10 = vsel %vm3038_vm5, %v338_v57, %v632_v40  ;;  %v3457_v15 = vld [vmem:[#allocation2 + $0xb4] sm:$0xff]  ;;  %v692_v16 = vsel %vm3053_vm7, %v481_v61, %v691_v48  ;;  %v552_v23 = vshrl.u32 %v284_v55, 16  ;;  %v260_v57 = vld [vmem:[%s3026_s5 + $0x1c] sm:$0xf] }
  0x7d   : > { %631 = vst.msk [vmem:[#allocation2 + $0x28] sm:$0xf] %vm197_vm0, %v337_v6  ;;  %v546_v20 = vrot.slane %v544_v4, 7  ;;  %v555_v17 = vshll.u32 %v284_v55, 16  ;;  %v773_v53 = vld [vmem:[#allocation2 + $0xbc] sm:$0x1]  ;;  %v489_v27 = vor.u32 %v487_v2, %v486_v12  ;;  %v1198_v43 = vsel %vm1177_vm8, %v1196_v37, %v1197_v50 }
  0x7e   : > { %1234 = vrot.lane.b32.xlu0 %v3399_v35, %s2935_s6  ;;  %634 = vst [vmem:[#allocation2 + $0x2c] sm:$0x1] %v633_v10  ;;  %v491_v28 = vrot.slane %v486_v12, 4  ;;  %v340_v29 = vshrl.u32 %v3449_v58, 16  ;;  %v903_v35 = vunpack.c.l.b16 %v773_v53  ;;  %v1223_v30 = vrot.slane %v3457_v15, 1 }
  0x7f   : > { %693 = vst [vmem:[#allocation2 + $0x90] sm:$0xf] %v692_v16  ;;  %v549_v33 = vor.u32 %v547_v13, %v546_v20  ;;  %v550_v21 = vrot.slane %v546_v20, 4  ;;  %v490_v32 = vsel %vm3045_vm6, %v482_v1, %v489_v27  ;;  %v554_v25 = vrot.slane %v552_v23, 7  ;;  %v635_v61 = vld [vmem:[#allocation2 + $0x30] sm:$0xf] }
  0x80   : > { %1163 = vrot.lane.b32.xlu1 %v3424_v14, %s2936_s7  ;;  %v696_v36 = vsel %vm3038_vm5, %v491_v28, %v695_v3  ;;  %v1106_v19 = vshrl.u32 %v3457_v15, 16  ;;  %v921_v14 = vpack.c.b16 %v903_v35, %v903_v35  ;;  %694 = vst.msk [vmem:[#allocation2 + $0x94] sm:$0xf] %vm197_vm0, %v490_v32  ;;  %v342_v42 = vrot.slane %v340_v29, 7 }
  0x81   : > { %1236 = vrot.lane.b32.xlu2 %v3420_v9, %s2935_s6  ;;  %v3473_v40 = vld [vmem:[#allocation2 + $0x54] sm:$0xff]  ;;  %v720_v41 = vsel %vm3053_vm7, %v549_v33, %v719_v45  ;;  %v1108_v9 = vshll.u32 %v3457_v15, 16  ;;  %697 = vst [vmem:[#allocation2 + $0x98] sm:$0x1] %v696_v36  ;;  %v557_v47 = vor.u32 %v555_v17, %v554_v25  ;;  %v559_v48 = vrot.slane %v554_v25, 4 }
  0x82   : > { %v749_v46 = vld [vmem:[#allocation2 + $0x5c] sm:$0x1]  ;;  %v343_v0 = vshll.u32 %v3449_v58, 16  ;;  %v1212_v63 = vrot.slane %v3404_v39, 1  ;;  %v1224_v51 = vrot.slane %v921_v14, 1  ;;  %v1012_v54 = vshll.u32 %v3473_v40, 16 }
  0x83   : > { %v895_v52 = vunpack.c.l.b16 %v749_v46  ;;  %721 = vst [vmem:[#allocation2 + $0xc0] sm:$0xf] %v720_v41  ;;  %v558_v26 = vsel %vm3045_vm6, %v550_v21, %v557_v47  ;;  %v724_v37 = vsel %vm3038_vm5, %v559_v48, %v723_v38  ;;  %v1110_v50 = vrot.slane %v1108_v9, 1  ;;  %v639_v33 = vld [vmem:[#allocation2 + $0x38] sm:$0x1] }
  0x84   : > { %v3487_v55 = vld [vmem:[#allocation2 + $0x24] sm:$0xff]  ;;  %v1113_v56 = vshll.u32 %v921_v14, 16  ;;  %v1225_v39 = vsel %vm1177_vm8, %v1223_v30, %v1224_v51  ;;  %722 = vst.msk [vmem:[#allocation2 + $0xc4] sm:$0xf] %vm197_vm0, %v558_v26  ;;  %v345_v58 = vor.u32 %v343_v0, %v342_v42  ;;  %v1010_v1 = vshrl.u32 %v3473_v40, 16 }
  0x85   : > { %v3496_v59 = vpack.c.b16 %v895_v52, %v895_v52  ;;  %v737_v60 = vld [vmem:[#allocation2 + $0x2c] sm:$0x1]  ;;  %725 = vst [vmem:[#allocation2 + $0xc8] sm:$0x1] %v724_v37  ;;  %v1111_v3 = vor.u32 %v1110_v50, %v1106_v19  ;;  %v1014_v6 = vrot.slane %v1012_v54, 1  ;;  %v1187_v12 = vrot.slane %v3487_v55, 1 }
  0x86   : > { %1244 = vrot.lane.b32.xlu0 %v1198_v43, %s2935_s6  ;;  %v891_v2 = vunpack.c.l.b16 %v737_v60  ;;  %v1115_v4 = vrot.slane %v1113_v56, 1  ;;  %v348_v13 = vshrl.u32 %v260_v57, 16  ;;  %v351_v20 = vshll.u32 %v260_v57, 16  ;;  %v267_v21 = vld [vmem:[%s3026_s5 + $0x38] sm:$0xf] }
  0x87   : > { %v1017_v10 = vshll.u32 %v3496_v59, 16  ;;  %v636_v23 = vsel %vm3053_vm7, %v345_v58, %v635_v61  ;;  %v346_v53 = vrot.slane %v342_v42, 4  ;;  %v1213_v28 = vsel %vm1177_vm8, %v1211_v44, %v1212_v63  ;;  %v3510_v35 = vld [vmem:[#allocation2 + $0x90] sm:$0xff]  ;;  %v268_v52 = vld [vmem:[%s3026_s5 + $0x3c] sm:$0xf]  ;;  %s3924_s5 = scalar_lea.vmem [#allocation3], %s3886_s30 }
  0x88   : > { %1262 = vrot.lane.b32.xlu1 %v1225_v39, %s2935_s6  ;;  %v909_v45 = vpack.c.b16 %v891_v2, %v891_v2  ;;  %v1116_v16 = vsel %vm924_vm9, %v1111_v3, %v1115_v4  ;;  %v764_v17 = vld [vmem:[#allocation2 + $0x98] sm:$0x1]  ;;  %v350_v27 = vrot.slane %v348_v13, 7  ;;  %637 = vst [vmem:[#allocation2 + $0x30] sm:$0xf] %v636_v23  ;;  %v1015_v32 = vor.u32 %v1014_v6, %v1010_v1  ;;  %s2488_s20 = sshll.u32 %s3924_s5, 4  ;;  %s2489_s20 = int_to_ptr.vmem [resolvable:$true] %s2488_s20 }
  0x89   : > { %1171 = vrot.lane.b32.xlu2 %v1116_v16, %s2936_s7  ;;  %v900_v30 = vunpack.c.l.b16 %v764_v17  ;;  %v1019_v38 = vrot.slane %v1017_v10, 1  ;;  %v962_v41 = vshrl.u32 %v3487_v55, 16  ;;  %v964_v9 = vshll.u32 %v3487_v55, 16  ;;  %v663_v3 = vld [vmem:[#allocation2 + $0x60] sm:$0xf] }
  0x8a   : > { %v1188_v29 = vrot.slane %v909_v45, 1  ;;  %v353_v36 = vor.u32 %v351_v20, %v350_v27  ;;  %v355_v25 = vrot.slane %v350_v27, 4  ;;  %v969_v46 = vshll.u32 %v909_v45, 16 }
  0x8b   : > { %v3514_v14 = vld [vmem:[#allocation2 + $0xc0] sm:$0xff]  ;;  %v408_v47 = vshrl.u32 %v267_v21, 16  ;;  %v3523_v48 = vpack.c.b16 %v900_v30, %v900_v30  ;;  %v1070_v0 = vshrl.u32 %v3510_v35, 16  ;;  %v1072_v63 = vshll.u32 %v3510_v35, 16 }
  0x8c   : > { %v1189_v19 = vsel %vm1177_vm8, %v1187_v12, %v1188_v29  ;;  %v776_v44 = vld [vmem:[#allocation2 + $0xc8] sm:$0x1]  ;;  %v354_v42 = vsel %vm3045_vm6, %v346_v53, %v353_v36  ;;  %v640_v43 = vsel %vm3038_vm5, %v355_v25, %v639_v33  ;;  %v1118_v54 = vshrl.u32 %v3514_v14, 16 }
  0x8d   : > { %v904_v51 = vunpack.c.l.b16 %v776_v44  ;;  %638 = vst.msk [vmem:[#allocation2 + $0x34] sm:$0xf] %vm197_vm0, %v354_v42  ;;  %v1120_v26 = vshll.u32 %v3514_v14, 16  ;;  %v966_v37 = vrot.slane %v964_v9, 1  ;;  %v971_v50 = vrot.slane %v969_v46, 1 }
  0x8e   : > { %1254 = vrot.lane.b32.xlu0 %v1213_v28, %s2935_s6  ;;  %641 = vst [vmem:[#allocation2 + $0x38] sm:$0x1] %v640_v43  ;;  %v1020_v56 = vsel %vm924_vm9, %v1015_v32, %v1019_v38  ;;  %v410_v39 = vrot.slane %v408_v47, 7  ;;  %v411_v60 = vshll.u32 %v267_v21, 16  ;;  %v416_v1 = vshrl.u32 %v268_v52, 16 }
  0x8f   : > { %v922_v57 = vpack.c.b16 %v904_v51, %v904_v51  ;;  %v1122_v58 = vrot.slane %v1120_v26, 1  ;;  %v967_v61 = vor.u32 %v966_v37, %v962_v41  ;;  %v419_v2 = vshll.u32 %v268_v52, 16  ;;  %v667_v53 = vld [vmem:[#allocation2 + $0x68] sm:$0x1] }
  0x90   : > { %1238 = vrot.lane.b32.xlu1 %v1189_v19, %s2935_s6  ;;  %v1074_v4 = vrot.slane %v1072_v63, 1  ;;  %v1077_v6 = vshll.u32 %v3523_v48, 16  ;;  %v413_v12 = vor.u32 %v411_v60, %v410_v39  ;;  %v418_v16 = vrot.slane %v416_v1, 7  ;;  %v728_v52 = vld [vmem:[#allocation2 + $0x8] sm:$0x1] }
  0x91   : > { %v1125_v10 = vshll.u32 %v922_v57, 16  ;;  %v1123_v13 = vor.u32 %v1122_v58, %v1118_v54  ;;  %v972_v45 = vsel %vm924_vm9, %v967_v61, %v971_v50  ;;  %v414_v23 = vrot.slane %v410_v39, 4  ;;  %v3563_v50 = vld [vmem:[#allocation2] sm:$0xff] }
  0x92   : > { %1147 = vrot.lane.b32.xlu2 %v972_v45, %s2936_s7  ;;  %v664_v17 = vsel %vm3053_vm7, %v413_v12, %v663_v3  ;;  %v421_v28 = vor.u32 %v419_v2, %v418_v16  ;;  %v423_v29 = vrot.slane %v418_v16, 4  ;;  %v1199_v30 = vrot.slane %v3473_v40, 1  ;;  %v779_v16 = vld [vmem:[#allocation2 + $0xd4] sm:$0x1] }
  0x93   : > { %v1127_v20 = vrot.slane %v1125_v10, 1  ;;  %665 = vst [vmem:[#allocation2 + $0x60] sm:$0xf] %v664_v17  ;;  %v1200_v33 = vrot.slane %v3496_v59, 1  ;;  %v1075_v21 = vor.u32 %v1074_v4, %v1070_v0  ;;  %v1079_v32 = vrot.slane %v1077_v6, 1 }
  0x94   : > { %v3539_v27 = vld [vmem:[#allocation2 + $0x30] sm:$0xff]  ;;  %v422_v41 = vsel %vm3045_vm6, %v414_v23, %v421_v28  ;;  %v668_v9 = vsel %vm3038_vm5, %v423_v29, %v667_v53  ;;  %v1214_v0 = vrot.slane %v3510_v35, 1  ;;  %v1215_v7 = vrot.slane %v3523_v48, 1 }
  0x95   : > { %v1128_v36 = vsel %vm924_vm9, %v1123_v13, %v1127_v20  ;;  %v740_v25 = vld [vmem:[#allocation2 + $0x38] sm:$0x1]  ;;  %v974_v38 = vshrl.u32 %v3539_v27, 16  ;;  %v976_v19 = vshll.u32 %v3539_v27, 16  ;;  %666 = vst.msk [vmem:[#allocation2 + $0x64] sm:$0xf] %vm197_vm0, %v422_v41  ;;  %v1201_v42 = vsel %vm1177_vm8, %v1199_v30, %v1200_v33 }
  0x96   : > { %1155 = vrot.lane.b32.xlu0 %v1020_v56, %s2936_s7  ;;  %v892_v11 = vunpack.c.l.b16 %v740_v25  ;;  %v1080_v43 = vsel %vm924_vm9, %v1075_v21, %v1079_v32  ;;  %669 = vst [vmem:[#allocation2 + $0x68] sm:$0x1] %v668_v9  ;;  %v1226_v63 = vrot.slane %v3514_v14, 1  ;;  %v1227_v51 = vrot.slane %v922_v57, 1  ;;  %v3579_v21 = vld [vmem:[#allocation2 + $0xcc] sm:$0xff] }
  0x97   : > { %v978_v59 = vrot.slane %v976_v19, 1  ;;  %v888_v56 = vunpack.c.l.b16 %v728_v52  ;;  %v1216_v39 = vsel %vm1177_vm8, %v1214_v0, %v1215_v7  ;;  %v1190_v3 = vrot.slane %v3539_v27, 1 }
  0x98   : > { %1173 = vrot.lane.b32.xlu1 %v1128_v36, %s2936_s7  ;;  %v910_v44 = vpack.c.b16 %v892_v11, %v892_v11  ;;  %v1228_v60 = vsel %vm1177_vm8, %v1226_v63, %v1227_v51  ;;  %v928_v6 = vshll.u32 %v3563_v50, 16  ;;  %v926_v17 = vshrl.u32 %v3563_v50, 16 }
  0x99   : > { %v979_v46 = vor.u32 %v978_v59, %v974_v38  ;;  %v906_v4 = vpack.c.b16 %v888_v56, %v888_v56  ;;  %v1178_v29 = vrot.slane %v3563_v50, 1  ;;  %v905_v32 = vunpack.c.l.b16 %v779_v16 }
  0x9a   : > { %v981_v47 = vshll.u32 %v910_v44, 16  ;;  %1246 = vrot.lane.b32.xlu2 %v1201_v42, %s2935_s6  ;;  %v1191_v10 = vrot.slane %v910_v44, 1  ;;  %v930_v53 = vrot.slane %v928_v6, 1  ;;  %v1132_v41 = vshll.u32 %v3579_v21, 16 }
  0x9b   : > { %v933_v28 = vshll.u32 %v906_v4, 16  ;;  %v1179_v33 = vrot.slane %v906_v4, 1  ;;  %v923_v19 = vpack.c.b16 %v905_v32, %v905_v32  ;;  %v1130_v44 = vshrl.u32 %v3579_v21, 16 }
  0x9c   : > { %v983_v8 = vrot.slane %v981_v47, 1  ;;  %v3561_v26 = vld [vmem:[#allocation2 + $0x60] sm:$0xff]  ;;  %v1192_v30 = vsel %vm1177_vm8, %v1190_v3, %v1191_v10  ;;  %v931_v25 = vor.u32 %v930_v53, %v926_v17  ;;  %v1134_v59 = vrot.slane %v1132_v41, 1 }
  0x9d   : > { %v752_v37 = vld [vmem:[#allocation2 + $0x68] sm:$0x1]  ;;  %v1022_v48 = vshrl.u32 %v3561_v26, 16  ;;  %v1024_v57 = vshll.u32 %v3561_v26, 16  ;;  %v1202_v1 = vrot.slane %v3561_v26, 1  ;;  %v935_v11 = vrot.slane %v933_v28, 1 }
  0x9e   : > { %1165 = vrot.lane.b32.xlu0 %v1080_v43, %s2936_s7  ;;  %v984_v54 = vsel %vm924_vm9, %v979_v46, %v983_v8  ;;  %v896_v58 = vunpack.c.l.b16 %v752_v37  ;;  %v1180_v38 = vsel %vm1177_vm8, %v1178_v29, %v1179_v33  ;;  %v1137_v42 = vshll.u32 %v923_v19, 16 }
  0x9f   : > { %v1026_v2 = vrot.slane %v1024_v57, 1  ;;  %v936_v9 = vsel %vm924_vm9, %v931_v25, %v935_v11  ;;  %v1229_v43 = vrot.slane %v3579_v21, 1  ;;  %v1230_v46 = vrot.slane %v923_v19, 1 }
  0xa0   : > { %1149 = vrot.lane.b32.xlu1 %v984_v54, %s2936_s7  ;;  %v914_v61 = vpack.c.b16 %v896_v58, %v896_v58  ;;  %v1135_v47 = vor.u32 %v1134_v59, %v1130_v44  ;;  %v1139_v8 = vrot.slane %v1137_v42, 1 }
  0xa1   : > { %v1027_v13 = vor.u32 %v1026_v2, %v1022_v48  ;;  %v1231_v0 = vsel %vm1177_vm8, %v1229_v43, %v1230_v46 }
  0xa2   : > { %1256 = vrot.lane.b32.xlu2 %v1216_v39, %s2935_s6  ;;  %v1203_v12 = vrot.slane %v914_v61, 1  ;;  %v1029_v45 = vshll.u32 %v914_v61, 16  ;;  %v1140_v7 = vsel %vm924_vm9, %v1135_v47, %v1139_v8 }
  0xa4   : > { %v1204_v20 = vsel %vm1177_vm8, %v1202_v1, %v1203_v12  ;;  %v1031_v23 = vrot.slane %v1029_v45, 1  ;;  %v1261_v52 = vpop.permute.xlu1 %1260 }
  0xa6   : > { %1264 = vrot.lane.b32.xlu0 %v1228_v60, %s2935_s6  ;;  %v1032_v36 = vsel %vm924_vm9, %v1027_v13, %v1031_v23 }
  0xa8   : > { %1248 = vrot.lane.b32.xlu1 %v1204_v20, %s2935_s6 }
  0xaa   : > { %1157 = vrot.lane.b32.xlu2 %v1032_v36, %s2936_s7 }
  0xae   : > { %1240 = vrot.lane.b32.xlu0 %v1192_v30, %s2935_s6 }
  0xb0   : > { %1232 = vrot.lane.b32.xlu1 %v1180_v38, %s2935_s6 }
  0xb6   : > { %1141 = vrot.lane.b32.xlu0 %v936_v9, %s2936_s7 }
  0xb8   : > { %1266 = vrot.lane.b32.xlu1 %v1231_v0, %s2935_s6 }
  0xbb   : > { %v1251_v63 = vpop.permute.xlu2 %1250 }
  0xbe   : > { %1175 = vrot.lane.b32.xlu0 %v1140_v7, %s2936_s7  ;;  %s2890_s7 = scalar_lea.hbm %s4704_s4, 512 }
  0xbf   : > { %p2892_p1 = scmp.lt.s32.totalorder %s2890_s7, %s2886_s27 }
  0xc1   : > { %p2893_p2 = por %p2892_p1, %p2891_p0 }
  0xc3   : > { %v1259_v51 = vpop.permute.xlu2 %1258  ;;  %p2894_p3 = pnand %p2893_p2, %p2889_p13 }
  0xcb   : > { %v1144_v54 = vpop.permute.xlu2 %1143 }
  0xd0   : > { %v1253_v37 = vpop.permute.xlu0 %1252 }
  0xd2   : > { %v1162_v56 = vpop.permute.xlu1 %1161 }
  0xd3   : > { %v1290_v39 = vsel %vm1268_vm10, %v3286_v31, %v1162_v56  ;;  %v1154_v58 = vpop.permute.xlu2 %1153  ;;  %v2867_v31 = vld [vmem:[#allocation2 + $0xa8] sm:$0xff] }
  0xd4   : > { %v3598_v60 = vsel %vm1305_vm11, %v1290_v39, %v1253_v37 }
  0xd5   : > { %1407 = vrot.lane.b32.xlu1 %v3598_v60, %s2937_s8 }
  0xd8   : > { %v1160_v48 = vpop.permute.xlu0 %1159 }
  0xd9   : > { %v1288_v57 = vsel %vm1268_vm10, %v3307_v24, %v1160_v48 }
  0xda   : > { %v3605_v61 = vsel %vm1305_vm11, %v1288_v57, %v1251_v63  ;;  %v1170_v1 = vpop.permute.xlu1 %1169  ;;  %v1493_v63 = vld [vmem:[%s4701_s1 + $0x10] sm:$0x3]  ;;  %v2680_v57 = vld [vmem:[%s4701_s1] sm:$0xff] }
  0xdb   : > { %1374 = vrot.lane.b32.xlu2 %v3605_v61, %s2938_s9  ;;  %v1298_v2 = vsel %vm1268_vm10, %v2867_v31, %v1170_v1  ;;  %v1237_v10 = vpop.permute.xlu2 %1236 }
  0xdc   : > { %v3611_v4 = vsel %vm1305_vm11, %v1298_v2, %v1261_v52 }
  0xe0   : > { %v1168_v3 = vpop.permute.xlu0 %1167 }
  0xe1   : > { %v1296_v6 = vsel %vm1268_vm10, %v3329_v62, %v1168_v3 }
  0xe2   : > { %v3616_v24 = vsel %vm1305_vm11, %v1296_v6, %v1259_v51  ;;  %v1146_v12 = vpop.permute.xlu1 %1145  ;;  %v1503_v51 = vunpack.c.l.b16 %v1493_v63 }
  0xe3   : > { %1382 = vrot.lane.b32.xlu0 %v3616_v24, %s2938_s9  ;;  %1415 = vrot.lane.b32.xlu2 %v3611_v4, %s2937_s8  ;;  %v1274_v13 = vsel %vm1268_vm10, %v3354_v34, %v1146_v12  ;;  %v1272_v34 = vsel %vm1268_vm10, %v3363_v49, %v1144_v54  ;;  %v1172_v28 = vpop.permute.xlu2 %1171 }
  0xe4   : > { %v3625_v45 = vsel %vm1305_vm11, %v1274_v13, %v1237_v10  ;;  %v1300_v19 = vsel %vm1268_vm10, %v3457_v15, %v1172_v28  ;;  %v1506_v54 = vpack.c.b16 %v1503_v51, %v1503_v51 }
  0xe5   : > { %1391 = vrot.lane.b32.xlu1 %v3625_v45, %s2937_s8 }
  0xe6   : > { %v1544_v56 = vsel %vm1542_vm12, %v1506_v54, 0 }
  0xe7   : > { %2684 = vmatpush.bf16.msra.mxu2 %v1544_v56  ;;  %2685 = vmatpush.bf16.msra.mxu3 %v1544_v56 }
  0xe8   : > { %v1152_v62 = vpop.permute.xlu0 %1151  ;;  %1551 = vmatpush.bf16.msra.mxu0 %v1544_v56  ;;  %2683 = vmatpush.bf16.msra.mxu1 %v1544_v56 }
  0xe9   : > { %v1280_v16 = vsel %vm1268_vm10, %v3342_v22, %v1152_v62  ;;  %v1282_v22 = vsel %vm1268_vm10, %v3378_v5, %v1154_v58  ;;  %v2681_v58 = vld [vmem:[%s4701_s1 + $0x8] sm:$0xff] }
  0xea   : > { %v1243_v20 = vpop.permute.xlu1 %1242 }
  0xeb   : > { %v3632_v23 = vsel %vm1305_vm11, %v1280_v16, %v1243_v20  ;;  %2687 = vmatpush.bf16.msra.mxu2 %v2681_v58  ;;  %2688 = vmatpush.bf16.msra.mxu3 %v2681_v58 }
  0xec   : > { %1366 = vrot.lane.b32.xlu0 %v3632_v23, %s2938_s9  ;;  %v1148_v32 = vpop.permute.xlu2 %1147  ;;  %1552 = vmatpush.bf16.msra.mxu0 %v2681_v58 }
  0xed   : > { %v1276_v15 = vsel %vm1268_vm10, %v3487_v55, %v1148_v32  ;;  %2686 = vmatpush.bf16.msra.mxu1 %v2681_v58 }
  0xef   : > { %2690 = vmatpush.bf16.msra.mxu2 %v2680_v57  ;;  %2691 = vmatpush.bf16.msra.mxu3 %v2680_v57 }
  0xf0   : > { %v1235_v17 = vpop.permute.xlu0 %1234  ;;  %1553 = vmatpush.bf16.msra.mxu0 %v2680_v57 }
  0xf1   : > { %v3639_v53 = vsel %vm1305_vm11, %v1272_v34, %v1235_v17  ;;  %2689 = vmatpush.bf16.msra.mxu1 %v2680_v57 }
  0xf2   : > { %1358 = vrot.lane.b32.xlu2 %v3639_v53, %s2938_s9  ;;  %v1164_v29 = vpop.permute.xlu1 %1163 }
  0xf3   : > { %v1292_v36 = vsel %vm1268_vm10, %v3387_v18, %v1164_v29 }
  0xf4   : > { %1384 = vrot.lane.b32.xlu0 %v3611_v4, %s2938_s9  ;;  %v1247_v38 = vpop.permute.xlu2 %1246 }
  0xf8   : > { %v1245_v30 = vpop.permute.xlu0 %1244 }
  0xf9   : > { %v3648_v33 = vsel %vm1305_vm11, %v1282_v22, %v1245_v30 }
  0xfa   : > { %1399 = vrot.lane.b32.xlu2 %v3648_v33, %s2937_s8  ;;  %v1263_v49 = vpop.permute.xlu1 %1262 }
  0xfb   : > { %v3668_v18 = vsel %vm1305_vm11, %v1300_v19, %v1263_v49 }
  0xfc   : > { %1360 = vrot.lane.b32.xlu0 %v3625_v45, %s2938_s9 }
 0x100   : > { %v1255_v25 = vpop.permute.xlu0 %1254 }
 0x101   : > { %v3657_v11 = vsel %vm1305_vm11, %v1292_v36, %v1255_v25 }
 0x102   : > { %1376 = vrot.lane.b32.xlu2 %v3598_v60, %s2938_s9  ;;  %1409 = vrot.lane.b32.xlu1 %v3657_v11, %s2937_s8  ;;  %v1239_v5 = vpop.permute.xlu1 %1238 }
 0x103   : > { %v3684_v46 = vsel %vm1305_vm11, %v1276_v15, %v1239_v5 }
 0x108   : > { %v1156_v41 = vpop.permute.xlu0 %1155 }
 0x109   : > { %v1284_v9 = vsel %vm1268_vm10, %v3473_v40, %v1156_v41  ;;  %v1257_v40 = vpop.permute.xlu2 %1256 }
 0x10a   : > { %1368 = vrot.lane.b32.xlu1 %v3648_v33, %s2938_s9  ;;  %1417 = vrot.lane.b32.xlu2 %v3668_v18, %s2937_s8  ;;  %v3675_v44 = vsel %vm1305_vm11, %v1284_v9, %v1247_v38  ;;  %v1174_v59 = vpop.permute.xlu1 %1173 }
 0x10b   : > { %1401 = vrot.lane.b32.xlu0 %v3675_v44, %s2937_s8  ;;  %v1302_v8 = vsel %vm1268_vm10, %v3514_v14, %v1174_v59 }
 0x110   : > { %v1166_v42 = vpop.permute.xlu0 %1165 }
 0x111   : > { %v1294_v43 = vsel %vm1268_vm10, %v3510_v35, %v1166_v42  ;;  %v1158_v39 = vpop.permute.xlu2 %1157 }
 0x112   : > { %1378 = vrot.lane.b32.xlu1 %v3657_v11, %s2938_s9  ;;  %1393 = vrot.lane.b32.xlu2 %v3684_v46, %s2937_s8  ;;  %v3691_v47 = vsel %vm1305_vm11, %v1294_v43, %v1257_v40  ;;  %v1150_v55 = vpop.permute.xlu1 %1149  ;;  %v1286_v48 = vsel %vm1268_vm10, %v3561_v26, %v1158_v39 }
 0x113   : > { %1411 = vrot.lane.b32.xlu0 %v3691_v47, %s2937_s8  ;;  %v1278_v14 = vsel %vm1268_vm10, %v3539_v27, %v1150_v55 }
 0x118   : > { %v1265_v35 = vpop.permute.xlu0 %1264 }
 0x119   : > { %v1339_v0 = vsel %vm1305_vm11, %v1302_v8, %v1265_v35 }
 0x11a   : > { %1419 = vrot.lane.b32.xlu1 %v1339_v0, %s2937_s8  ;;  %1386 = vrot.lane.b32.xlu2 %v3668_v18, %s2938_s9  ;;  %v1249_v7 = vpop.permute.xlu1 %1248 }
 0x11b   : > { %1370 = vrot.lane.b32.xlu0 %v3675_v44, %s2938_s9  ;;  %v1323_v31 = vsel %vm1305_vm11, %v1286_v48, %v1249_v7 }
 0x120   : > { %v1241_v52 = vpop.permute.xlu0 %1240 }
 0x121   : > { %v1315_v37 = vsel %vm1305_vm11, %v1278_v14, %v1241_v52 }
 0x122   : > { %1395 = vrot.lane.b32.xlu1 %v1315_v37, %s2937_s8  ;;  %1362 = vrot.lane.b32.xlu2 %v3684_v46, %s2938_s9  ;;  %v1233_v27 = vpop.permute.xlu1 %1232 }
 0x123   : > { %1380 = vrot.lane.b32.xlu0 %v3691_v47, %s2938_s9 }
 0x128   : > { %v1142_v1 = vpop.permute.xlu0 %1141 }
 0x129   : > { %v1270_v20 = vsel %vm1268_vm10, %v3563_v50, %v1142_v1 }
 0x12a   : > { %1388 = vrot.lane.b32.xlu1 %v1339_v0, %s2938_s9  ;;  %1403 = vrot.lane.b32.xlu2 %v1323_v31, %s2937_s8  ;;  %v1267_v26 = vpop.permute.xlu1 %1266  ;;  %v1307_v28 = vsel %vm1305_vm11, %v1270_v20, %v1233_v27 }
 0x130   : > { %v1176_v2 = vpop.permute.xlu0 %1175 }
 0x131   : > { %v1304_v3 = vsel %vm1268_vm10, %v3579_v21, %v1176_v2 }
 0x132   : > { %1364 = vrot.lane.b32.xlu1 %v1315_v37, %s2938_s9  ;;  %1413 = vrot.lane.b32.xlu2 %v3616_v24, %s2937_s8  ;;  %v1341_v6 = vsel %vm1305_vm11, %v1304_v3, %v1267_v26 }
 0x133   : > { %1421 = vrot.lane.b32.xlu0 %v1341_v6, %s2937_s8 }
 0x135   : > { %v1375_v10 = vpop.permute.xlu2 %1374 }
 0x136   : > { %v1441_v12 = vsel %vm1423_vm13, %v1323_v31, %v1375_v10 }
 0x13a   : > { %1405 = vrot.lane.b32.xlu1 %v3605_v61, %s2937_s8  ;;  %1372 = vrot.lane.b32.xlu2 %v1323_v31, %s2938_s9 }
 0x13b   : > { %1397 = vrot.lane.b32.xlu0 %v3632_v23, %s2937_s8 }
 0x13d   : > { %v1416_v21 = vpop.permute.xlu2 %1415 }
 0x147   : > { %v1408_v13 = vpop.permute.xlu1 %1407 }
 0x148   : > { %v1474_v62 = vsel %vm1456_vm14, %v1441_v12, %v1408_v13 }
 0x149   : > { %2648 = vmatmul.msk.bf16.vlgmr.msra.gmra.mxu2 %vm1509_vm15, %v1474_v62  ;;  %v3804_v62 = vld [vmem:[%s4702_s2] ss:$0 sm:$0xff] }
 0x14c   : > { %v1359_v16 = vpop.permute.xlu2 %1358 }
 0x14d   : > { %v1425_v22 = vsel %vm1423_vm13, %v1307_v28, %v1359_v16 }
 0x154   : > { %v1400_v34 = vpop.permute.xlu2 %1399 }
 0x155   : > { %v1383_v17 = vpop.permute.xlu0 %1382 }
 0x156   : > { %v1449_v29 = vsel %vm1423_vm13, %v3691_v47, %v1383_v17 }
 0x157   : > { %v1482_v30 = vsel %vm1456_vm14, %v1449_v29, %v1416_v21  ;;  %v1392_v49 = vpop.permute.xlu1 %1391 }
 0x158   : > { %2652 = vmatmul.msk.bf16.vlgmr.msra.gmra.mxu3 %vm1509_vm15, %v1482_v30  ;;  %v1458_v32 = vsel %vm1456_vm14, %v1425_v22, %v1392_v49 }
 0x159   : > { %2640 = vmatmul.msk.bf16.vlgmr.msra.gmra.mxu0 %vm1509_vm15, %v1458_v32 }
 0x15c   : > { %v1377_v36 = vpop.permute.xlu2 %1376 }
 0x15d   : > { %v1443_v43 = vsel %vm1423_vm13, %v3605_v61, %v1377_v36 }
 0x15e   : > { %v1367_v50 = vpop.permute.xlu0 %1366 }
 0x15f   : > { %v1433_v25 = vsel %vm1423_vm13, %v1315_v37, %v1367_v50 }
 0x160   : > { %v1466_v5 = vsel %vm1456_vm14, %v1433_v25, %v1400_v34 }
 0x161   : > { %2644 = vmatmul.msk.bf16.vlgmr.msra.gmra.mxu1 %vm1509_vm15, %v1466_v5 }
 0x164   : > { %v1418_v38 = vpop.permute.xlu2 %1417 }
 0x166   : > { %v1385_v19 = vpop.permute.xlu0 %1384 }
 0x167   : > { %v1451_v41 = vsel %vm1423_vm13, %v3616_v24, %v1385_v19 }
 0x168   : > { %v1484_v9 = vsel %vm1456_vm14, %v1451_v41, %v1418_v38 }
 0x169   : > { %2653 = vmatmul.msk.bf16.gmra.mxu3 %vm1509_vm15, %v1484_v9 }
 0x16c   : > { %v1394_v59 = vpop.permute.xlu2 %1393 }
 0x16e   : > { %v1361_v15 = vpop.permute.xlu0 %1360 }
 0x16f   : > { %v1427_v40 = vsel %vm1423_vm13, %v3639_v53, %v1361_v15 }
 0x170   : > { %v1460_v42 = vsel %vm1456_vm14, %v1427_v40, %v1394_v59 }
 0x171   : > { %2641 = vmatmul.msk.bf16.gmra.mxu0 %vm1509_vm15, %v1460_v42 }
 0x174   : > { %v1410_v47 = vpop.permute.xlu1 %1409  ;;  %v1387_v24 = vpop.permute.xlu2 %1386 }
 0x175   : > { %v1476_v55 = vsel %vm1456_vm14, %v1443_v43, %v1410_v47  ;;  %v1453_v52 = vsel %vm1423_vm13, %v3611_v4, %v1387_v24 }
 0x176   : > { %2649 = vmatmul.msk.bf16.gmra.mxu2 %vm1509_vm15, %v1476_v55 }
 0x17c   : > { %v1369_v8 = vpop.permute.xlu1 %1368  ;;  %v1363_v7 = vpop.permute.xlu2 %1362 }
 0x17d   : > { %v1435_v35 = vsel %vm1423_vm13, %v3632_v23, %v1369_v8  ;;  %v1402_v0 = vpop.permute.xlu0 %1401  ;;  %v1429_v58 = vsel %vm1423_vm13, %v3625_v45, %v1363_v7 }
 0x17e   : > { %v1468_v53 = vsel %vm1456_vm14, %v1435_v35, %v1402_v0 }
 0x17f   : > { %2645 = vmatmul.msk.bf16.gmra.mxu1 %vm1509_vm15, %v1468_v53 }
 0x184   : > { %v1379_v63 = vpop.permute.xlu1 %1378  ;;  %v1404_v54 = vpop.permute.xlu2 %1403 }
 0x185   : > { %v1445_v61 = vsel %vm1423_vm13, %v3598_v60, %v1379_v63  ;;  %v1412_v51 = vpop.permute.xlu0 %1411 }
 0x186   : > { %v1478_v14 = vsel %vm1456_vm14, %v1445_v61, %v1412_v51 }
 0x187   : > { %2650 = vmatmul.msk.bf16.gmra.mxu2 %vm1509_vm15, %v1478_v14 }
 0x18c   : > { %v1420_v23 = vpop.permute.xlu1 %1419  ;;  %v1414_v57 = vpop.permute.xlu2 %1413 }
 0x18d   : > { %v1371_v37 = vpop.permute.xlu0 %1370  ;;  %v1486_v56 = vsel %vm1456_vm14, %v1453_v52, %v1420_v23 }
 0x18e   : > { %v1437_v39 = vsel %vm1423_vm13, %v3648_v33, %v1371_v37  ;;  %2654 = vmatmul.msk.bf16.gmra.mxu3 %vm1509_vm15, %v1486_v56 }
 0x18f   : > { %v1470_v60 = vsel %vm1456_vm14, %v1437_v39, %v1404_v54 }
 0x190   : > { %2646 = vmatmul.msk.bf16.gmra.mxu1 %vm1509_vm15, %v1470_v60 }
 0x194   : > { %v1396_v27 = vpop.permute.xlu1 %1395  ;;  %v1373_v6 = vpop.permute.xlu2 %1372 }
 0x195   : > { %v1381_v48 = vpop.permute.xlu0 %1380  ;;  %v1462_v4 = vsel %vm1456_vm14, %v1429_v58, %v1396_v27 }
 0x196   : > { %v1447_v1 = vsel %vm1423_vm13, %v3657_v11, %v1381_v48  ;;  %2642 = vmatmul.msk.bf16.gmra.mxu0 %vm1509_vm15, %v1462_v4  ;;  %v1439_v11 = vsel %vm1423_vm13, %v3675_v44, %v1373_v6  ;;  %v3809_v44 = vld [vmem:[%s4703_s3] ss:$0 sm:$0xff] }
 0x197   : > { %v1480_v33 = vsel %vm1456_vm14, %v1447_v1, %v1414_v57 }
 0x198   : > { %2651 = vmatmul.msk.bf16.gmra.mxu2 %vm1509_vm15, %v1480_v33 }
 0x19c   : > { %v1389_v31 = vpop.permute.xlu1 %1388 }
 0x19d   : > { %v1455_v2 = vsel %vm1423_vm13, %v3668_v18, %v1389_v31 }
 0x1a4   : > { %v1365_v26 = vpop.permute.xlu1 %1364 }
 0x1a5   : > { %v1422_v45 = vpop.permute.xlu0 %1421  ;;  %v1431_v21 = vsel %vm1423_vm13, %v3684_v46, %v1365_v26 }
 0x1a6   : > { %v1488_v3 = vsel %vm1456_vm14, %v1455_v2, %v1422_v45 }
 0x1a7   : > { %2655 = vmatmul.msk.bf16.gmra.mxu3 %vm1509_vm15, %v1488_v3 }
 0x1ac   : > { %v1406_v10 = vpop.permute.xlu1 %1405 }
 0x1ad   : > { %v1398_v12 = vpop.permute.xlu0 %1397  ;;  %v1472_v13 = vsel %vm1456_vm14, %v1439_v11, %v1406_v10 }
 0x1ae   : > { %2647 = vmatmul.msk.bf16.gmra.mxu1 %vm1509_vm15, %v1472_v13  ;;  %v1464_v18 = vsel %vm1456_vm14, %v1431_v21, %v1398_v12 }
 0x1af   : > { %2643 = vmatmul.msk.bf16.gmra.mxu0 %vm1509_vm15, %v1464_v18 }
 0x1cc   : > { %v1595_v46 = vpop.f32.mrf.mxu2 }
 0x1cd   : > { %v1655_v16 = vmul.f32 %v3804_v62, %v1595_v46 }
 0x1cf   : > { %v3813_v20 = vadd.f32 %v3809_v44, %v1655_v16 }
 0x1d1   : > { %v1723_v34 = vand.u32 2147483647, %v3813_v20  ;;  %vm2331_vm1 = vcmp.ge.f32.partialorder %v3813_v20, 0.0 }
 0x1d3   : > { %v1755_v17 = vsub.f32 0.0, %v1723_v34 }
 0x1d4   : > { %v1597_v28 = vpop.f32.mrf.mxu2 }
 0x1d5   : > { %v1803_v29 = vmul.f32 1.442695, %v1755_v17  ;;  %v1656_v22 = vmul.f32 %v3804_v62, %v1597_v28 }
 0x1d6   : > { %v1555_v30 = vpop.f32.mrf.mxu0 }
 0x1d7   : > { %2739 = vpow2.f32 %v1803_v29  ;;  %v3818_v49 = vadd.f32 %v3809_v44, %v1656_v22  ;;  %v1639_v32 = vmul.f32 %v3804_v62, %v1555_v30 }
 0x1d9   : > { %v1724_v36 = vand.u32 2147483647, %v3818_v49  ;;  %v3823_v50 = vadd.f32 %v3809_v44, %v1639_v32  ;;  %vm2332_vm9 = vcmp.ge.f32.partialorder %v3818_v49, 0.0 }
 0x1db   : > { %v1756_v25 = vsub.f32 0.0, %v1724_v36  ;;  %v1615_v5 = vpop.f32.mrf.mxu3  ;;  %v1707_v38 = vand.u32 2147483647, %v3823_v50  ;;  %vm2315_vm11 = vcmp.ge.f32.partialorder %v3823_v50, 0.0 }
 0x1dc   : > { %v1663_v19 = vmul.f32 %v3804_v62, %v1615_v5 }
 0x1dd   : > { %v3827_v41 = vpop.eup %2739  ;;  %v1805_v9 = vmul.f32 1.442695, %v1756_v25  ;;  %v1739_v59 = vsub.f32 0.0, %v1707_v38 }
 0x1de   : > { %v1851_v15 = vadd.f32 1.0, %v3827_v41  ;;  %v3831_v40 = vadd.f32 %v3809_v44, %v1663_v19  ;;  %v1557_v42 = vpop.f32.mrf.mxu0  ;;  %v1575_v43 = vpop.f32.mrf.mxu1 }
 0x1df   : > { %2741 = vpow2.f32 %v1805_v9  ;;  %v1771_v47 = vmul.f32 1.442695, %v1739_v59  ;;  %v1640_v55 = vmul.f32 %v3804_v62, %v1557_v42  ;;  %v1647_v24 = vmul.f32 %v3804_v62, %v1575_v43 }
 0x1e0   : > { %2743 = vrcp.f32 %v1851_v15  ;;  %v1731_v8 = vand.u32 2147483647, %v3831_v40  ;;  %v2100_v48 = vand.u32 2147483647, %v1851_v15  ;;  %v2102_v57 = vand.u32 2147483648, %v1851_v15 }
 0x1e1   : > { %2745 = vpow2.f32 %v1771_v47  ;;  %v3837_v35 = vadd.f32 %v3809_v44, %v1640_v55  ;;  %v3840_v0 = vadd.f32 %v3809_v44, %v1647_v24  ;;  %vm2096_vm2 = vweird.f32 %v1851_v15 }
 0x1e2   : > { %v1763_v53 = vsub.f32 0.0, %v1731_v8  ;;  %vm3867_vm3 = vcmp.eq.f32.partialorder %v2100_v48, 8.507059e+37  ;;  %v2103_v21 = vor.u32 1.1754944e-38, %v2102_v57 }
 0x1e3   : > { %v1617_v7 = vpop.f32.mrf.mxu3  ;;  %v1708_v63 = vand.u32 2147483647, %v3837_v35  ;;  %v1715_v51 = vand.u32 2147483647, %v3840_v0 }
 0x1e4   : > { %v1664_v61 = vmul.f32 %v3804_v62, %v1617_v7  ;;  %v1819_v52 = vmul.f32 1.442695, %v1763_v53 }
 0x1e5   : > { %v3845_v14 = vpop.eup %2741  ;;  %v1740_v54 = vsub.f32 0.0, %v1708_v63  ;;  %v1747_v39 = vsub.f32 0.0, %v1715_v51 }
 0x1e6   : > { %v2744_v23 = vpop.eup %2743  ;;  %v3848_v37 = vadd.f32 1.0, %v3845_v14  ;;  %v3851_v56 = vadd.f32 %v3809_v44, %v1664_v61  ;;  %2747 = vpow2.f32 %v1819_v52  ;;  %v1577_v12 = vpop.f32.mrf.mxu1 }
 0x1e7   : > { %v3853_v60 = vpop.eup %2745  ;;  %v2092_v58 = vmul.f32 %v2744_v23, %v1851_v15  ;;  %v1773_v27 = vmul.f32 1.442695, %v1740_v54  ;;  %vm2097_vm0 = vweird.f32 %v2744_v23  ;;  %v1787_v31 = vmul.f32 1.442695, %v1747_v39 }
 0x1e8   : > { %2749 = vrcp.f32 %v3848_v37  ;;  %v3857_v1 = vadd.f32 1.0, %v3853_v60  ;;  %v1732_v33 = vand.u32 2147483647, %v3851_v56  ;;  %v2114_v2 = vand.u32 2147483647, %v3848_v37  ;;  %vm2098_vm4 = vmor %vm2096_vm2, %vm2097_vm0 }
 0x1e9   : > { %v2093_v4 = vsub.f32 1.0, %v2092_v58  ;;  %2751 = vpow2.f32 %v1773_v27  ;;  %v2116_v45 = vand.u32 2147483648, %v3848_v37  ;;  %vm2110_vm5 = vweird.f32 %v3848_v37 }
 0x1ea   : > { %2753 = vrcp.f32 %v3857_v1  ;;  %v1764_v3 = vsub.f32 0.0, %v1732_v33  ;;  %v1876_v46 = vand.u32 2147483647, %v3857_v1  ;;  %vm3878_vm6 = vcmp.eq.f32.partialorder %v2114_v2, 8.507059e+37 }
 0x1eb   : > { %v2094_v26 = vmul.f32 %v2744_v23, %v2093_v4  ;;  %2755 = vpow2.f32 %v1787_v31  ;;  %v2117_v22 = vor.u32 1.1754944e-38, %v2116_v45  ;;  %vm1872_vm7 = vweird.f32 %v3857_v1 }
 0x1ec   : > { %v3864_v6 = vpop.eup %2747  ;;  %v1821_v16 = vmul.f32 1.442695, %v1764_v3  ;;  %v1620_v34 = vpop.f32.mrf.mxu3  ;;  %v1878_v36 = vand.u32 2147483648, %v3857_v1  ;;  %v1648_v25 = vmul.f32 %v3804_v62, %v1577_v12  ;;  %vm3900_vm10 = vcmp.eq.f32.partialorder %v1876_v46, 8.507059e+37 }
 0x1ed   : > { %v2095_v11 = vadd.f32 %v2744_v23, %v2094_v26  ;;  %v3874_v18 = vadd.f32 1.0, %v3864_v6  ;;  %v1665_v9 = vmul.f32 %v3804_v62, %v1620_v34 }
 0x1ee   : > { %v2750_v13 = vpop.eup %2749  ;;  %v1879_v7 = vor.u32 1.1754944e-38, %v1878_v36  ;;  %v3918_v61 = vadd.f32 %v3809_v44, %v1648_v25 }
 0x1ef   : > { %v2099_v17 = vsel %vm2098_vm4, %v2744_v23, %v2095_v11  ;;  %v2106_v28 = vmul.f32 %v2750_v13, %v3848_v37  ;;  %v3882_v30 = vpop.eup %2751  ;;  %2757 = vrcp.f32 %v3874_v18  ;;  %vm2111_vm8 = vweird.f32 %v2750_v13 }
 0x1f0   : > { %v2104_v32 = vsel %vm3867_vm3, %v2103_v21, %v2099_v17  ;;  %v2754_v5 = vpop.eup %2753  ;;  %2759 = vpow2.f32 %v1821_v16  ;;  %v3905_v43 = vadd.f32 1.0, %v3882_v30  ;;  %v2212_v55 = vand.u32 2147483647, %v3874_v18  ;;  %vm2112_vm12 = vmor %vm2110_vm5, %vm2111_vm8 }
 0x1f1   : > { %v2363_v38 = vmul.f32 %v3827_v41, %v2104_v32  ;;  %v2107_v19 = vsub.f32 1.0, %v2106_v28  ;;  %v3896_v59 = vpop.eup %2755  ;;  %v1868_v15 = vmul.f32 %v2754_v5, %v3857_v1  ;;  %v3921_v51 = vadd.f32 %v3809_v44, %v1665_v9 }
 0x1f2   : > { %v3911_v24 = vadd.f32 1.0, %v3896_v59  ;;  %2761 = vrcp.f32 %v3905_v43  ;;  %vm2208_vm13 = vweird.f32 %v3874_v18  ;;  %vm1873_vm14 = vweird.f32 %v2754_v5 }
 0x1f3   : > { %v2395_v41 = vsel %vm2331_vm1, %v2104_v32, %v2363_v38  ;;  %v2108_v47 = vmul.f32 %v2750_v13, %v2107_v19  ;;  %v1869_v53 = vsub.f32 1.0, %v1868_v15  ;;  %vm3935_vm15 = vcmp.eq.f32.partialorder %v2212_v55, 8.507059e+37  ;;  %vm1874_vm0 = vmor %vm1872_vm7, %vm1873_vm14 }
 0x1f4   : > { %v2427_v8 = vmul.f32 %v2395_v41, %v3813_v20  ;;  %2763 = vrcp.f32 %v3911_v24  ;;  %v2214_v20 = vand.u32 2147483648, %v3874_v18  ;;  %v1890_v48 = vand.u32 2147483647, %v3905_v43 }
 0x1f5   : > { %v2109_v63 = vadd.f32 %v2750_v13, %v2108_v47  ;;  %v2758_v52 = vpop.eup %2757  ;;  %v1870_v54 = vmul.f32 %v2754_v5, %v1869_v53  ;;  %v1892_v33 = vand.u32 2147483648, %v3905_v43  ;;  %v1988_v2 = vand.u32 2147483647, %v3911_v24 }
 0x1f6   : > { %2459 = vst [vmem:[%s3924_s5 + $0x80] sm:$0xff] %v2427_v8  ;;  %v3932_v23 = vpop.eup %2759  ;;  %v2204_v58 = vmul.f32 %v2758_v52, %v3874_v18  ;;  %v1990_v45 = vand.u32 2147483648, %v3911_v24  ;;  %v2215_v11 = vor.u32 1.1754944e-38, %v2214_v20  ;;  %vm2339_vm1 = vcmp.ge.f32.partialorder %v3831_v40, 0.0 }
 0x1f7   : > { %v2113_v39 = vsel %vm2112_vm12, %v2750_v13, %v2109_v63  ;;  %v1871_v4 = vadd.f32 %v2754_v5, %v1870_v54  ;;  %v3943_v57 = vadd.f32 1.0, %v3932_v23  ;;  %vm1886_vm2 = vweird.f32 %v3905_v43  ;;  %v1560_v13 = vpop.f32.mrf.mxu0 }
 0x1f8   : > { %v2118_v37 = vsel %vm3878_vm6, %v2117_v22, %v2113_v39  ;;  %v2205_v26 = vsub.f32 1.0, %v2204_v58  ;;  %v3951_v3 = vpop.eup %2761  ;;  %vm2209_vm3 = vweird.f32 %v2758_v52  ;;  %vm1984_vm4 = vweird.f32 %v3911_v24 }
 0x1f9   : > { %v2364_v31 = vmul.f32 %v3845_v14, %v2118_v37  ;;  %v1875_v10 = vsel %vm1874_vm0, %v2754_v5, %v1871_v4  ;;  %2765 = vrcp.f32 %v3943_v57  ;;  %v1882_v34 = vmul.f32 %v3951_v3, %v3905_v43  ;;  %vm2210_vm7 = vmor %vm2208_vm13, %vm2209_vm3  ;;  %v1600_v54 = vpop.f32.mrf.mxu2 }
 0x1fa   : > { %v3956_v21 = vpop.eup %2763  ;;  %v2206_v1 = vmul.f32 %v2758_v52, %v2205_v26  ;;  %v1880_v12 = vsel %vm3900_vm10, %v1879_v7, %v1875_v10  ;;  %vm3967_vm5 = vcmp.eq.f32.partialorder %v1890_v48, 8.507059e+37  ;;  %v1893_v28 = vor.u32 1.1754944e-38, %v1892_v33 }
 0x1fb   : > { %v2396_v14 = vsel %vm2332_vm9, %v2118_v37, %v2364_v31  ;;  %v2347_v16 = vmul.f32 %v3853_v60, %v1880_v12  ;;  %v2226_v22 = vand.u32 2147483647, %v3943_v57  ;;  %v1980_v32 = vmul.f32 %v3956_v21, %v3911_v24 }
 0x1fc   : > { %v2428_v46 = vmul.f32 %v2396_v14, %v3818_v49  ;;  %v2207_v29 = vadd.f32 %v2758_v52, %v2206_v1  ;;  %vm3974_vm6 = vcmp.eq.f32.partialorder %v1988_v2, 8.507059e+37  ;;  %v1991_v49 = vor.u32 1.1754944e-38, %v1990_v45  ;;  %v1622_v2 = vpop.f32.mrf.mxu3 }
 0x1fd   : > { %v2379_v60 = vsel %vm2315_vm11, %v1880_v12, %v2347_v16  ;;  %v2228_v25 = vand.u32 2147483648, %v3943_v57  ;;  %v1883_v5 = vsub.f32 1.0, %v1882_v34  ;;  %v1716_v38 = vand.u32 2147483647, %v3918_v61 }
 0x1fe   : > { %2460 = vst [vmem:[%s3924_s5 + $0x88] sm:$0xff] %v2428_v46  ;;  %v2211_v19 = vsel %vm2210_vm7, %v2758_v52, %v2207_v29  ;;  %v2411_v9 = vmul.f32 %v2379_v60, %v3823_v50  ;;  %vm2222_vm8 = vweird.f32 %v3943_v57  ;;  %vm1887_vm9 = vweird.f32 %v3951_v3 }
 0x1ff   : > { %vm2316_vm10 = vcmp.ge.f32.partialorder %v3837_v35, 0.0  ;;  %v1981_v18 = vsub.f32 1.0, %v1980_v32  ;;  %v2766_v15 = vpop.eup %2765  ;;  %v2216_v42 = vsel %vm3935_vm15, %v2215_v11, %v2211_v19  ;;  %v1884_v41 = vmul.f32 %v3951_v3, %v1883_v5  ;;  %vm1888_vm15 = vmor %vm1886_vm2, %vm1887_vm9  ;;  %v1562_v45 = vpop.f32.mrf.mxu0 }
 0x200   : > { %vm2323_vm11 = vcmp.ge.f32.partialorder %v3840_v0, 0.0  ;;  %v1748_v47 = vsub.f32 0.0, %v1716_v38  ;;  %v1733_v55 = vand.u32 2147483647, %v3921_v51  ;;  %v2371_v50 = vmul.f32 %v3864_v6, %v2216_v42  ;;  %2443 = vst [vmem:[%s3924_s5] sm:$0xff] %v2411_v9 }
 0x201   : > { %v2218_v8 = vmul.f32 %v2766_v15, %v3943_v57  ;;  %vm3998_vm12 = vcmp.eq.f32.partialorder %v2226_v22, 8.507059e+37  ;;  %v1982_v7 = vmul.f32 %v3956_v21, %v1981_v18  ;;  %vm1985_vm13 = vweird.f32 %v3956_v21 }
 0x202   : > { %vm2223_vm14 = vweird.f32 %v2766_v15  ;;  %v1885_v63 = vadd.f32 %v3951_v3, %v1884_v41  ;;  %v1789_v52 = vmul.f32 1.442695, %v1748_v47  ;;  %v1765_v20 = vsub.f32 0.0, %v1733_v55  ;;  %vm1986_vm0 = vmor %vm1984_vm4, %vm1985_vm13 }
 0x203   : > { %v2403_v6 = vsel %vm2339_vm1, %v2216_v42, %v2371_v50  ;;  %v2219_v39 = vsub.f32 1.0, %v2218_v8  ;;  %v1983_v58 = vadd.f32 %v3956_v21, %v1982_v7  ;;  %v1641_v27 = vmul.f32 %v3804_v62, %v1560_v13  ;;  %vm2224_vm1 = vmor %vm2222_vm8, %vm2223_vm14 }
 0x204   : > { %v2435_v48 = vmul.f32 %v2403_v6, %v3831_v40  ;;  %v1889_v37 = vsel %vm1888_vm15, %v3951_v3, %v1885_v63  ;;  %2767 = vpow2.f32 %v1789_v52  ;;  %v1823_v4 = vmul.f32 1.442695, %v1765_v20 }
 0x205   : > { %v2220_v33 = vmul.f32 %v2766_v15, %v2219_v39  ;;  %v1894_v31 = vsel %vm3967_vm5, %v1893_v28, %v1889_v37  ;;  %v1987_v43 = vsel %vm1986_vm0, %v3956_v21, %v1983_v58  ;;  %v4021_v26 = vadd.f32 %v3809_v44, %v1641_v27 }
 0x206   : > { %2467 = vst [vmem:[%s3924_s5 + $0xc0] sm:$0xff] %v2435_v48  ;;  %v2348_v40 = vmul.f32 %v3882_v30, %v1894_v31  ;;  %v1992_v24 = vsel %vm3974_vm6, %v1991_v49, %v1987_v43  ;;  %2769 = vpow2.f32 %v1823_v4  ;;  %v1657_v3 = vmul.f32 %v3804_v62, %v1600_v54  ;;  %v1580_v49 = vpop.f32.mrf.mxu1 }
 0x207   : > { %v2221_v11 = vadd.f32 %v2766_v15, %v2220_v33  ;;  %v2229_v10 = vor.u32 1.1754944e-38, %v2228_v25  ;;  %v2355_v14 = vmul.f32 %v3896_v59, %v1992_v24  ;;  %v1709_v21 = vand.u32 2147483647, %v4021_v26  ;;  %v1602_v25 = vpop.f32.mrf.mxu2 }
 0x208   : > { %v2380_v30 = vsel %vm2316_vm10, %v1894_v31, %v2348_v40  ;;  %v4036_v1 = vadd.f32 %v3809_v44, %v1657_v3  ;;  %v1666_v12 = vmul.f32 %v3804_v62, %v1622_v2  ;;  %v1642_v13 = vmul.f32 %v3804_v62, %v1562_v45 }
 0x209   : > { %v2225_v46 = vsel %vm2224_vm1, %v2766_v15, %v2221_v11  ;;  %v2412_v59 = vmul.f32 %v2380_v30, %v3837_v35  ;;  %v2387_v16 = vsel %vm2323_vm11, %v1992_v24, %v2355_v14  ;;  %v1741_v34 = vsub.f32 0.0, %v1709_v21 }
 0x20a   : > { %v4043_v57 = vpop.eup %2767  ;;  %v2230_v17 = vsel %vm3998_vm12, %v2229_v10, %v2225_v46  ;;  %v2419_v28 = vmul.f32 %v2387_v16, %v3840_v0  ;;  %v1725_v29 = vand.u32 2147483647, %v4036_v1  ;;  %v4055_v36 = vadd.f32 %v3809_v44, %v1666_v12 }
 0x20b   : > { %v2372_v22 = vmul.f32 %v3932_v23, %v2230_v17  ;;  %2444 = vst [vmem:[%s3924_s5 + $0x8] sm:$0xff] %v2412_v59  ;;  %v4052_v32 = vadd.f32 1.0, %v4043_v57  ;;  %v1775_v35 = vmul.f32 1.442695, %v1741_v34  ;;  %vm2340_vm2 = vcmp.ge.f32.partialorder %v3851_v56, 0.0 }
 0x20c   : > { %v4057_v60 = vpop.eup %2769  ;;  %2451 = vst [vmem:[%s3924_s5 + $0x40] sm:$0xff] %v2419_v28  ;;  %v1757_v0 = vsub.f32 0.0, %v1725_v29  ;;  %v4063_v23 = vadd.f32 %v3809_v44, %v1642_v13  ;;  %v1649_v9 = vmul.f32 %v3804_v62, %v1580_v49  ;;  %v1734_v15 = vand.u32 2147483647, %v4055_v36 }
 0x20d   : > { %v2404_v5 = vsel %vm2340_vm2, %v2230_v17, %v2372_v22  ;;  %2771 = vrcp.f32 %v4052_v32  ;;  %v4067_v19 = vadd.f32 1.0, %v4057_v60  ;;  %v1658_v42 = vmul.f32 %v3804_v62, %v1602_v25 }
 0x20e   : > { %v2436_v38 = vmul.f32 %v2404_v5, %v3851_v56  ;;  %2773 = vpow2.f32 %v1775_v35  ;;  %v1807_v18 = vmul.f32 1.442695, %v1757_v0  ;;  %v2002_v41 = vand.u32 2147483647, %v4052_v32  ;;  %v1582_v48 = vpop.f32.mrf.mxu1 }
 0x20f   : > { %2775 = vrcp.f32 %v4067_v19  ;;  %v1766_v47 = vsub.f32 0.0, %v1734_v15  ;;  %v1710_v56 = vand.u32 2147483647, %v4063_v23  ;;  %v2004_v55 = vand.u32 2147483648, %v4052_v32 }
 0x210   : > { %2468 = vst [vmem:[%s3924_s5 + $0xc8] sm:$0xff] %v2436_v38  ;;  %2777 = vpow2.f32 %v1807_v18  ;;  %v4078_v50 = vadd.f32 %v3809_v44, %v1649_v9  ;;  %v4081_v63 = vadd.f32 %v3809_v44, %v1658_v42  ;;  %vm1998_vm3 = vweird.f32 %v4052_v32 }
 0x211   : > { %v1825_v53 = vmul.f32 1.442695, %v1766_v47  ;;  %v1742_v7 = vsub.f32 0.0, %v1710_v56  ;;  %vm4087_vm4 = vcmp.eq.f32.partialorder %v2002_v41, 8.507059e+37  ;;  %v2240_v39 = vand.u32 2147483647, %v4067_v19 }
 0x212   : > { %v1717_v6 = vand.u32 2147483647, %v4078_v50  ;;  %v2005_v33 = vor.u32 1.1754944e-38, %v2004_v55  ;;  %vm2236_vm5 = vweird.f32 %v4067_v19  ;;  %vm2324_vm6 = vcmp.ge.f32.partialorder %v3918_v61, 0.0 }
 0x213   : > { %v2772_v8 = vpop.eup %2771  ;;  %2779 = vpow2.f32 %v1825_v53  ;;  %v1777_v27 = vmul.f32 1.442695, %v1742_v7  ;;  %v2242_v45 = vand.u32 2147483648, %v4067_v19  ;;  %v1726_v40 = vand.u32 2147483647, %v4081_v63 }
 0x214   : > { %v4083_v52 = vpop.eup %2773  ;;  %v1994_v20 = vmul.f32 %v2772_v8, %v4052_v32  ;;  %v1749_v31 = vsub.f32 0.0, %v1717_v6  ;;  %vm1999_vm7 = vweird.f32 %v2772_v8  ;;  %v1650_v11 = vmul.f32 %v3804_v62, %v1582_v48 }
 0x215   : > { %v4094_v58 = vadd.f32 1.0, %v4083_v52  ;;  %v2776_v37 = vpop.eup %2775  ;;  %vm4108_vm8 = vcmp.eq.f32.partialorder %v2240_v39, 8.507059e+37  ;;  %vm2341_vm9 = vcmp.ge.f32.partialorder %v3921_v51, 0.0  ;;  %vm2000_vm10 = vmor %vm1998_vm3, %vm1999_vm7  ;;  %v2243_v16 = vor.u32 1.1754944e-38, %v2242_v45 }
 0x216   : > { %v1995_v4 = vsub.f32 1.0, %v1994_v20  ;;  %v4097_v43 = vpop.eup %2777  ;;  %v2232_v2 = vmul.f32 %v2776_v37, %v4067_v19  ;;  %v1791_v21 = vmul.f32 1.442695, %v1749_v31  ;;  %vm2237_vm11 = vweird.f32 %v2776_v37 }
 0x217   : > { %2781 = vrcp.f32 %v4094_v58  ;;  %v4105_v3 = vadd.f32 1.0, %v4097_v43  ;;  %v1904_v12 = vand.u32 2147483647, %v4094_v58  ;;  %v1906_v13 = vand.u32 2147483648, %v4094_v58  ;;  %vm2238_vm13 = vmor %vm2236_vm5, %vm2237_vm11 }
 0x218   : > { %v1996_v24 = vmul.f32 %v2772_v8, %v1995_v4  ;;  %v2233_v10 = vsub.f32 1.0, %v2232_v2  ;;  %2783 = vpow2.f32 %v1777_v27  ;;  %v1758_v34 = vsub.f32 0.0, %v1726_v40 }
 0x219   : > { %2785 = vrcp.f32 %v4105_v3  ;;  %v4116_v46 = vpop.eup %2779  ;;  %v4124_v29 = vadd.f32 %v3809_v44, %v1650_v11  ;;  %vm1900_vm12 = vweird.f32 %v4094_v58  ;;  %v2128_v32 = vand.u32 2147483647, %v4105_v3 }
 0x21a   : > { %v1997_v30 = vadd.f32 %v2772_v8, %v1996_v24  ;;  %v2234_v59 = vmul.f32 %v2776_v37, %v2233_v10  ;;  %v4121_v28 = vadd.f32 1.0, %v4116_v46  ;;  %2787 = vpow2.f32 %v1791_v21 }
 0x21b   : > { %vm4134_vm14 = vcmp.eq.f32.partialorder %v1904_v12, 8.507059e+37  ;;  %v1907_v38 = vor.u32 1.1754944e-38, %v1906_v13  ;;  %vm2124_vm15 = vweird.f32 %v4105_v3  ;;  %v2130_v15 = vand.u32 2147483648, %v4105_v3 }
 0x21c   : > { %v2001_v17 = vsel %vm2000_vm10, %v2772_v8, %v1997_v30  ;;  %v2235_v49 = vadd.f32 %v2776_v37, %v2234_v59  ;;  %2789 = vrcp.f32 %v4121_v28  ;;  %vm2317_vm0 = vcmp.ge.f32.partialorder %v4021_v26, 0.0 }
 0x21d   : > { %v2782_v22 = vpop.eup %2781  ;;  %v2006_v35 = vsel %vm4087_vm4, %v2005_v33, %v2001_v17  ;;  %vm4154_vm1 = vcmp.eq.f32.partialorder %v2128_v32, 8.507059e+37  ;;  %v2254_v20 = vand.u32 2147483647, %v4121_v28  ;;  %v2256_v39 = vand.u32 2147483648, %v4121_v28  ;;  %v1605_v17 = vpop.f32.mrf.mxu2 }
 0x21e   : > { %v2356_v0 = vmul.f32 %v4043_v57, %v2006_v35  ;;  %v1896_v25 = vmul.f32 %v2782_v22, %v4094_v58  ;;  %v4139_v9 = vpop.eup %2783  ;;  %v2239_v18 = vsel %vm2238_vm13, %v2776_v37, %v2235_v49  ;;  %v1809_v57 = vmul.f32 1.442695, %v1758_v34 }
 0x21f   : > { %v2786_v42 = vpop.eup %2785  ;;  %v2244_v41 = vsel %vm4108_vm8, %v2243_v16, %v2239_v18  ;;  %v4148_v56 = vadd.f32 1.0, %v4139_v9  ;;  %vm1901_vm2 = vweird.f32 %v2782_v22  ;;  %v2131_v27 = vor.u32 1.1754944e-38, %v2130_v15 }
 0x220   : > { %v2388_v19 = vsel %vm2324_vm6, %v2006_v35, %v2356_v0  ;;  %v1897_v47 = vsub.f32 1.0, %v1896_v25  ;;  %v2373_v8 = vmul.f32 %v4057_v60, %v2244_v41  ;;  %v2120_v53 = vmul.f32 %v2786_v42, %v4105_v3  ;;  %v4159_v54 = vpop.eup %2787  ;;  %vm1902_vm6 = vmor %vm1900_vm12, %vm1901_vm2 }
 0x221   : > { %v2420_v55 = vmul.f32 %v2388_v19, %v3918_v61  ;;  %2791 = vrcp.f32 %v4148_v56  ;;  %vm2250_vm3 = vweird.f32 %v4121_v28  ;;  %vm2125_vm4 = vweird.f32 %v2786_v42 }
 0x222   : > { %v1898_v6 = vmul.f32 %v2782_v22, %v1897_v47  ;;  %v2405_v61 = vsel %vm2341_vm9, %v2244_v41, %v2373_v8  ;;  %v2121_v60 = vsub.f32 1.0, %v2120_v53  ;;  %v2790_v48 = vpop.eup %2789  ;;  %vm2333_vm5 = vcmp.ge.f32.partialorder %v4036_v1, 0.0  ;;  %vm2126_vm9 = vmor %vm2124_vm15, %vm2125_vm4 }
 0x223   : > { %2452 = vst [vmem:[%s3924_s5 + $0x48] sm:$0xff] %v2420_v55  ;;  %v2437_v37 = vmul.f32 %v2405_v61, %v3921_v51  ;;  %v4170_v33 = vadd.f32 1.0, %v4159_v54  ;;  %v2246_v2 = vmul.f32 %v2790_v48, %v4121_v28  ;;  %vm4175_vm7 = vcmp.eq.f32.partialorder %v2254_v20, 8.507059e+37 }
 0x224   : > { %v1899_v4 = vadd.f32 %v2782_v22, %v1898_v6  ;;  %v2122_v31 = vmul.f32 %v2786_v42, %v2121_v60  ;;  %v1918_v40 = vand.u32 2147483647, %v4148_v56  ;;  %v2257_v24 = vor.u32 1.1754944e-38, %v2256_v39  ;;  %v1625_v39 = vpop.f32.mrf.mxu3 }
 0x225   : > { %2469 = vst [vmem:[%s3924_s5 + $0xd0] sm:$0xff] %v2437_v37  ;;  %v1920_v11 = vand.u32 2147483648, %v4148_v56  ;;  %2793 = vrcp.f32 %v4170_v33  ;;  %v2247_v14 = vsub.f32 1.0, %v2246_v2  ;;  %vm1914_vm8 = vweird.f32 %v4148_v56 }
 0x226   : > { %v1903_v51 = vsel %vm1902_vm6, %v2782_v22, %v1899_v4  ;;  %v2123_v10 = vadd.f32 %v2786_v42, %v2122_v31  ;;  %vm2251_vm10 = vweird.f32 %v2790_v48  ;;  %vm2342_vm11 = vcmp.ge.f32.partialorder %v4055_v36, 0.0 }
 0x227   : > { %v1908_v58 = vsel %vm4134_vm14, %v1907_v38, %v1903_v51  ;;  %v2792_v21 = vpop.eup %2791  ;;  %2795 = vpow2.f32 %v1809_v57  ;;  %v1718_v12 = vand.u32 2147483647, %v4124_v29  ;;  %v2248_v59 = vmul.f32 %v2790_v48, %v2247_v14  ;;  %vm2252_vm13 = vmor %vm2250_vm3, %vm2251_vm10 }
 0x228   : > { %v2349_v30 = vmul.f32 %v4083_v52, %v1908_v58  ;;  %v2127_v13 = vsel %vm2126_vm9, %v2786_v42, %v2123_v10  ;;  %v1910_v16 = vmul.f32 %v2792_v21, %v4148_v56  ;;  %vm4193_vm12 = vcmp.eq.f32.partialorder %v1918_v40, 8.507059e+37  ;;  %v1585_v52 = vpop.f32.mrf.mxu1 }
 0x229   : > { %v2132_v22 = vsel %vm4154_vm1, %v2131_v27, %v2127_v13  ;;  %v1921_v35 = vor.u32 1.1754944e-38, %v1920_v11  ;;  %v2016_v49 = vand.u32 2147483647, %v4170_v33  ;;  %v2249_v25 = vadd.f32 %v2790_v48, %v2248_v59  ;;  %v1607_v11 = vpop.f32.mrf.mxu2 }
 0x22a   : > { %v2381_v3 = vsel %vm2317_vm0, %v1908_v58, %v2349_v30  ;;  %v2365_v0 = vmul.f32 %v4097_v43, %v2132_v22  ;;  %v1911_v5 = vsub.f32 1.0, %v1910_v16  ;;  %vm1915_vm14 = vweird.f32 %v2792_v21 }
 0x22b   : > { %v2413_v32 = vmul.f32 %v2381_v3, %v4021_v26  ;;  %v2794_v38 = vpop.eup %2793  ;;  %v1750_v18 = vsub.f32 0.0, %v1718_v12  ;;  %v1659_v15 = vmul.f32 %v3804_v62, %v1605_v17  ;;  %v1651_v57 = vmul.f32 %v3804_v62, %v1585_v52  ;;  %vm1916_vm15 = vmor %vm1914_vm8, %vm1915_vm14 }
 0x22c   : > { %v2397_v26 = vsel %vm2333_vm5, %v2132_v22, %v2365_v0  ;;  %v2253_v42 = vsel %vm2252_vm13, %v2790_v48, %v2249_v25  ;;  %v1912_v43 = vmul.f32 %v2792_v21, %v1911_v5  ;;  %v2008_v19 = vmul.f32 %v2794_v38, %v4170_v33 }
 0x22d   : > { %2445 = vst [vmem:[%s3924_s5 + $0x10] sm:$0xff] %v2413_v32  ;;  %v4213_v41 = vpop.eup %2795  ;;  %v2429_v28 = vmul.f32 %v2397_v26, %v4036_v1  ;;  %v2258_v47 = vsel %vm4175_vm7, %v2257_v24, %v2253_v42  ;;  %v2018_v55 = vand.u32 2147483648, %v4170_v33  ;;  %v1793_v8 = vmul.f32 1.442695, %v1750_v18 }
 0x22e   : > { %v2374_v53 = vmul.f32 %v4116_v46, %v2258_v47  ;;  %v1913_v7 = vadd.f32 %v2792_v21, %v1912_v43  ;;  %v2009_v20 = vsub.f32 1.0, %v2008_v19  ;;  %v4221_v6 = vadd.f32 1.0, %v4213_v41 }
 0x22f   : > { %2461 = vst [vmem:[%s3924_s5 + $0x90] sm:$0xff] %v2429_v28  ;;  %vm2013_vm0 = vweird.f32 %v2794_v38  ;;  %2797 = vpow2.f32 %v1793_v8  ;;  %v4228_v1 = vadd.f32 %v3809_v44, %v1659_v15  ;;  %v4231_v61 = vadd.f32 %v3809_v44, %v1651_v57  ;;  %v1627_v57 = vpop.f32.mrf.mxu3 }
 0x230   : > { %v2406_v46 = vsel %vm2342_vm11, %v2258_v47, %v2374_v53  ;;  %v1917_v60 = vsel %vm1916_vm15, %v2792_v21, %v1913_v7  ;;  %v2010_v27 = vmul.f32 %v2794_v38, %v2009_v20  ;;  %2799 = vrcp.f32 %v4221_v6  ;;  %v1565_v21 = vpop.f32.mrf.mxu0  ;;  %v1587_v5 = vpop.f32.mrf.mxu1 }
 0x231   : > { %v2438_v48 = vmul.f32 %v2406_v46, %v4055_v36  ;;  %v1922_v56 = vsel %vm4193_vm12, %v1921_v35, %v1917_v60  ;;  %v1667_v37 = vmul.f32 %v3804_v62, %v1625_v39  ;;  %vm2012_vm1 = vweird.f32 %v4170_v33 }
 0x232   : > { %v2350_v4 = vmul.f32 %v4139_v9, %v1922_v56  ;;  %v2011_v31 = vadd.f32 %v2794_v38, %v2010_v27  ;;  %v1727_v2 = vand.u32 2147483647, %v4228_v1  ;;  %vm2318_vm2 = vcmp.ge.f32.partialorder %v4063_v23, 0.0  ;;  %vm2014_vm3 = vmor %vm2012_vm1, %vm2013_vm0 }
 0x233   : > { %2470 = vst [vmem:[%s3924_s5 + $0xd8] sm:$0xff] %v2438_v48  ;;  %v2019_v45 = vor.u32 1.1754944e-38, %v2018_v55  ;;  %v1719_v36 = vand.u32 2147483647, %v4231_v61  ;;  %vm2017_vm4 = vcmp.eq.f32.partialorder %v2016_v49, 8.507059e+37  ;;  %v4251_v14 = vadd.f32 %v3809_v44, %v1667_v37 }
 0x234   : > { %v2382_v40 = vsel %vm2318_vm2, %v1922_v56, %v2350_v4  ;;  %v2015_v51 = vsel %vm2014_vm3, %v2794_v38, %v2011_v31  ;;  %v1759_v24 = vsub.f32 0.0, %v1727_v2  ;;  %vm2325_vm5 = vcmp.ge.f32.partialorder %v4078_v50, 0.0 }
 0x235   : > { %v4247_v9 = vpop.eup %2797  ;;  %v2414_v33 = vmul.f32 %v2382_v40, %v4063_v23  ;;  %v2020_v58 = vsel %vm2017_vm4, %v2019_v45, %v2015_v51  ;;  %v1751_v10 = vsub.f32 0.0, %v1719_v36  ;;  %v1735_v34 = vand.u32 2147483647, %v4251_v14 }
 0x236   : > { %v2800_v30 = vpop.eup %2799  ;;  %v2357_v12 = vmul.f32 %v4159_v54, %v2020_v58  ;;  %v4256_v13 = vadd.f32 1.0, %v4247_v9  ;;  %v1811_v59 = vmul.f32 1.442695, %v1759_v24  ;;  %v1660_v17 = vmul.f32 %v3804_v62, %v1607_v11 }
 0x237   : > { %2446 = vst [vmem:[%s3924_s5 + $0x18] sm:$0xff] %v2414_v33  ;;  %v2134_v16 = vmul.f32 %v2800_v30, %v4221_v6  ;;  %v1795_v23 = vmul.f32 1.442695, %v1751_v10  ;;  %v2142_v54 = vand.u32 2147483647, %v4221_v6  ;;  %v2144_v35 = vand.u32 2147483648, %v4221_v6 }
 0x238   : > { %v2389_v52 = vsel %vm2325_vm5, %v2020_v58, %v2357_v12  ;;  %2801 = vrcp.f32 %v4256_v13  ;;  %v1767_v49 = vsub.f32 0.0, %v1735_v34  ;;  %vm2139_vm6 = vweird.f32 %v2800_v30  ;;  %v1567_v7 = vpop.f32.mrf.mxu0  ;;  %v4327_v10 = vld [vmem:[%s4703_s3] ss:$0 sm:$0xff] }
 0x239   : > { %v2421_v3 = vmul.f32 %v2389_v52, %v4078_v50  ;;  %v2135_v22 = vsub.f32 1.0, %v2134_v16  ;;  %2803 = vpow2.f32 %v1811_v59  ;;  %v4268_v0 = vadd.f32 %v3809_v44, %v1660_v17 }
 0x23a   : > { %2805 = vpow2.f32 %v1795_v23  ;;  %v1643_v25 = vmul.f32 %v3804_v62, %v1565_v21  ;;  %vm2334_vm7 = vcmp.ge.f32.partialorder %v4081_v63, 0.0  ;;  %v1827_v50 = vmul.f32 1.442695, %v1767_v49 }
 0x23b   : > { %2453 = vst [vmem:[%s3924_s5 + $0x50] sm:$0xff] %v2421_v3  ;;  %v2136_v32 = vmul.f32 %v2800_v30, %v2135_v22  ;;  %vm2138_vm8 = vweird.f32 %v4221_v6  ;;  %vm4273_vm9 = vcmp.eq.f32.partialorder %v2142_v54, 8.507059e+37  ;;  %v1728_v15 = vand.u32 2147483647, %v4268_v0 }
 0x23c   : > { %vm2140_vm10 = vmor %vm2138_vm8, %vm2139_vm6  ;;  %v2145_v42 = vor.u32 1.1754944e-38, %v2144_v35  ;;  %2807 = vpow2.f32 %v1827_v50  ;;  %v4279_v43 = vadd.f32 %v3809_v44, %v1643_v25  ;;  %v1652_v19 = vmul.f32 %v3804_v62, %v1587_v5 }
 0x23d   : > { %v2137_v38 = vadd.f32 %v2800_v30, %v2136_v32  ;;  %v2030_v8 = vand.u32 2147483647, %v4256_v13  ;;  %v1760_v53 = vsub.f32 0.0, %v1728_v15  ;;  %v2032_v39 = vand.u32 2147483648, %v4256_v13  ;;  %v4359_v15 = vpop.f32.mrf.mxu2 }
 0x23e   : > { %v2802_v26 = vpop.eup %2801  ;;  %v1668_v60 = vmul.f32 %v3804_v62, %v1627_v57  ;;  %v1711_v4 = vand.u32 2147483647, %v4279_v43  ;;  %v4302_v31 = vadd.f32 %v3809_v44, %v1652_v19  ;;  %v1644_v2 = vmul.f32 %v3804_v62, %v1567_v7 }
 0x23f   : > { %v4282_v28 = vpop.eup %2803  ;;  %v2141_v47 = vsel %vm2140_vm10, %v2800_v30, %v2137_v38  ;;  %v2022_v55 = vmul.f32 %v2802_v26, %v4256_v13  ;;  %v1813_v37 = vmul.f32 1.442695, %v1760_v53  ;;  %vm2027_vm11 = vweird.f32 %v2802_v26 }
 0x240   : > { %v4286_v20 = vpop.eup %2805  ;;  %v2146_v6 = vsel %vm4273_vm9, %v2145_v42, %v2141_v47  ;;  %v4292_v46 = vadd.f32 1.0, %v4282_v28  ;;  %vm2026_vm12 = vweird.f32 %v4256_v13  ;;  %vm4312_vm13 = vcmp.eq.f32.partialorder %v2030_v8, 8.507059e+37 }
 0x241   : > { %v2366_v27 = vmul.f32 %v4213_v41, %v2146_v6  ;;  %v2023_v48 = vsub.f32 1.0, %v2022_v55  ;;  %v4297_v56 = vadd.f32 1.0, %v4286_v20  ;;  %vm2326_vm14 = vcmp.ge.f32.partialorder %v4124_v29, 0.0  ;;  %vm2028_vm15 = vmor %vm2026_vm12, %vm2027_vm11 }
 0x242   : > { %2809 = vrcp.f32 %v4292_v46  ;;  %v4308_v41 = vpop.eup %2807  ;;  %v2033_v44 = vor.u32 1.1754944e-38, %v2032_v39  ;;  %v2156_v11 = vand.u32 2147483647, %v4292_v46  ;;  %v1743_v33 = vsub.f32 0.0, %v1711_v4 }
 0x243   : > { %v2398_v45 = vsel %vm2334_vm7, %v2146_v6, %v2366_v27  ;;  %v2024_v36 = vmul.f32 %v2802_v26, %v2023_v48  ;;  %2811 = vrcp.f32 %v4297_v56  ;;  %v4318_v24 = vadd.f32 1.0, %v4308_v41 }
 0x244   : > { %v2430_v40 = vmul.f32 %v2398_v45, %v4081_v63  ;;  %2813 = vpow2.f32 %v1813_v37  ;;  %v1720_v63 = vand.u32 2147483647, %v4302_v31  ;;  %v4330_v21 = vadd.f32 %v4327_v10, %v1668_v60 }
 0x245   : > { %v2025_v62 = vadd.f32 %v2802_v26, %v2024_v36  ;;  %2815 = vrcp.f32 %v4318_v24  ;;  %v4333_v30 = vadd.f32 %v4327_v10, %v1644_v2  ;;  %vm2152_vm0 = vweird.f32 %v4292_v46 }
 0x246   : > { %2462 = vst [vmem:[%s3924_s5 + $0x98] sm:$0xff] %v2430_v40  ;;  %v2158_v59 = vand.u32 2147483648, %v4292_v46  ;;  %v1779_v16 = vmul.f32 1.442695, %v1743_v33  ;;  %vm2040_vm1 = vweird.f32 %v4297_v56  ;;  %v1752_v52 = vsub.f32 0.0, %v1720_v63 }
 0x247   : > { %v2029_v58 = vsel %vm2028_vm15, %v2802_v26, %v2025_v62  ;;  %vm4342_vm2 = vcmp.eq.f32.partialorder %v2156_v11, 8.507059e+37  ;;  %v2044_v54 = vand.u32 2147483647, %v4297_v56  ;;  %v2046_v35 = vand.u32 2147483648, %v4297_v56 }
 0x248   : > { %v2810_v12 = vpop.eup %2809  ;;  %v2034_v13 = vsel %vm4312_vm13, %v2033_v44, %v2029_v58  ;;  %2817 = vpow2.f32 %v1779_v16  ;;  %v1797_v25 = vmul.f32 1.442695, %v1752_v52  ;;  %vm2335_vm3 = vcmp.ge.f32.partialorder %v4228_v1, 0.0 }
 0x249   : > { %v2812_v23 = vpop.eup %2811  ;;  %v2358_v34 = vmul.f32 %v4247_v9, %v2034_v13  ;;  %v2148_v17 = vmul.f32 %v2810_v12, %v4292_v46  ;;  %v1736_v18 = vand.u32 2147483647, %v4330_v21  ;;  %vm2153_vm4 = vweird.f32 %v2810_v12 }
 0x24a   : > { %v2036_v22 = vmul.f32 %v2812_v23, %v4297_v56  ;;  %v4349_v49 = vpop.eup %2813  ;;  %v2159_v42 = vor.u32 1.1754944e-38, %v2158_v59  ;;  %vm2327_vm5 = vcmp.ge.f32.partialorder %v4231_v61, 0.0  ;;  %v1712_v19 = vand.u32 2147483647, %v4333_v30  ;;  %vm2154_vm8 = vmor %vm2152_vm0, %vm2153_vm4 }
 0x24b   : > { %v2390_v9 = vsel %vm2326_vm14, %v2034_v13, %v2358_v34  ;;  %v2149_v32 = vsub.f32 1.0, %v2148_v17  ;;  %v4356_v38 = vadd.f32 1.0, %v4349_v49  ;;  %v2816_v57 = vpop.eup %2815  ;;  %vm2041_vm6 = vweird.f32 %v2812_v23 }
 0x24c   : > { %v2422_v5 = vmul.f32 %v2390_v9, %v4124_v29  ;;  %v2037_v50 = vsub.f32 1.0, %v2036_v22  ;;  %v2260_v47 = vmul.f32 %v2816_v57, %v4318_v24  ;;  %vm4366_vm7 = vcmp.eq.f32.partialorder %v2044_v54, 8.507059e+37  ;;  %vm2042_vm9 = vmor %vm2040_vm1, %vm2041_vm6 }
 0x24d   : > { %v2150_v26 = vmul.f32 %v2810_v12, %v2149_v32  ;;  %2819 = vrcp.f32 %v4356_v38  ;;  %v2268_v53 = vand.u32 2147483647, %v4318_v24  ;;  %v2047_v6 = vor.u32 1.1754944e-38, %v2046_v35 }
 0x24e   : > { %2454 = vst [vmem:[%s3924_s5 + $0x58] sm:$0xff] %v2422_v5  ;;  %v2038_v29 = vmul.f32 %v2812_v23, %v2037_v50  ;;  %2821 = vpow2.f32 %v1797_v25  ;;  %v2261_v39 = vsub.f32 1.0, %v2260_v47  ;;  %v1768_v60 = vsub.f32 0.0, %v1736_v18  ;;  %v4373_v27 = vpop.eup %2817  ;;  %v1630_v18 = vpop.f32.mrf.mxu3 }
 0x24f   : > { %v2151_v55 = vadd.f32 %v2810_v12, %v2150_v26  ;;  %vm2265_vm10 = vweird.f32 %v2816_v57  ;;  %v2270_v37 = vand.u32 2147483648, %v4318_v24  ;;  %vm2343_vm11 = vcmp.ge.f32.partialorder %v4251_v14, 0.0 }
 0x250   : > { %v2039_v7 = vadd.f32 %v2812_v23, %v2038_v29  ;;  %v1744_v4 = vsub.f32 0.0, %v1712_v19  ;;  %v2262_v45 = vmul.f32 %v2816_v57, %v2261_v39  ;;  %v4382_v36 = vadd.f32 1.0, %v4373_v27 }
 0x251   : > { %v2155_v48 = vsel %vm2154_vm8, %v2810_v12, %v2151_v55  ;;  %vm2264_vm12 = vweird.f32 %v4318_v24  ;;  %vm4388_vm13 = vcmp.eq.f32.partialorder %v2268_v53, 8.507059e+37  ;;  %v1829_v33 = vmul.f32 1.442695, %v1768_v60 }
 0x252   : > { %v2160_v46 = vsel %vm4342_vm2, %v2159_v42, %v2155_v48  ;;  %v2043_v2 = vsel %vm2042_vm9, %v2812_v23, %v2039_v7  ;;  %v2263_v11 = vadd.f32 %v2816_v57, %v2262_v45  ;;  %2823 = vrcp.f32 %v4382_v36  ;;  %vm2266_vm14 = vmor %vm2264_vm12, %vm2265_vm10  ;;  %v1612_v23 = vpop.f32.mrf.mxu2 }
 0x253   : > { %v2367_v40 = vmul.f32 %v4282_v28, %v2160_v46  ;;  %v2048_v56 = vsel %vm4366_vm7, %v2047_v6, %v2043_v2  ;;  %v2820_v62 = vpop.eup %2819  ;;  %v2271_v24 = vor.u32 1.1754944e-38, %v2270_v37  ;;  %v1781_v12 = vmul.f32 1.442695, %v1744_v4 }
 0x254   : > { %v2359_v44 = vmul.f32 %v4286_v20, %v2048_v56  ;;  %v4394_v63 = vpop.eup %2821  ;;  %v2162_v58 = vmul.f32 %v2820_v62, %v4356_v38  ;;  %v2267_v59 = vsel %vm2266_vm14, %v2816_v57, %v2263_v11  ;;  %v2170_v16 = vand.u32 2147483647, %v4356_v38 }
 0x255   : > { %v2399_v28 = vsel %vm2335_vm3, %v2160_v46, %v2367_v40  ;;  %v2272_v17 = vsel %vm4388_vm13, %v2271_v24, %v2267_v59  ;;  %v2172_v3 = vand.u32 2147483648, %v4356_v38  ;;  %vm2167_vm15 = vweird.f32 %v2820_v62 }
 0x256   : > { %v2431_v13 = vmul.f32 %v2399_v28, %v4228_v1  ;;  %v2391_v20 = vsel %vm2327_vm5, %v2048_v56, %v2359_v44  ;;  %v2163_v52 = vsub.f32 1.0, %v2162_v58  ;;  %v2375_v22 = vmul.f32 %v4308_v41, %v2272_v17  ;;  %v1590_v56 = vpop.f32.mrf.mxu1 }
 0x257   : > { %v2423_v34 = vmul.f32 %v2391_v20, %v4231_v61  ;;  %v4411_v1 = vadd.f32 1.0, %v4394_v63  ;;  %2825 = vpow2.f32 %v1829_v33  ;;  %v4417_v61 = vld [vmem:[%s4702_s2] ss:$0 sm:$0xff]  ;;  %vm2336_vm0 = vcmp.ge.f32.partialorder %v4268_v0, 0.0 }
 0x258   : > { %2463 = vst [vmem:[%s3924_s5 + $0xa0] sm:$0xff] %v2431_v13  ;;  %v2164_v54 = vmul.f32 %v2820_v62, %v2163_v52  ;;  %2827 = vpow2.f32 %v1781_v12  ;;  %v1661_v35 = vmul.f32 %v4417_v61, %v4359_v15  ;;  %v1662_v9 = vmul.f32 %v4417_v61, %v1612_v23  ;;  %v2824_v41 = vpop.eup %2823 }
 0x259   : > { %2455 = vst [vmem:[%s3924_s5 + $0x60] sm:$0xff] %v2423_v34  ;;  %v2407_v32 = vsel %vm2343_vm11, %v2272_v17, %v2375_v22  ;;  %2829 = vrcp.f32 %v4411_v1  ;;  %vm2166_vm1 = vweird.f32 %v4356_v38  ;;  %v1924_v50 = vmul.f32 %v2824_v41, %v4382_v36 }
 0x25a   : > { %v2439_v25 = vmul.f32 %v2407_v32, %v4251_v14  ;;  %v2165_v5 = vadd.f32 %v2820_v62, %v2164_v54  ;;  %vm2168_vm2 = vmor %vm2166_vm1, %vm2167_vm15  ;;  %vm2171_vm3 = vcmp.eq.f32.partialorder %v2170_v16, 8.507059e+37  ;;  %v2173_v15 = vor.u32 1.1754944e-38, %v2172_v3 }
 0x25b   : > { %v1934_v57 = vand.u32 2147483648, %v4382_v36  ;;  %v4432_v26 = vadd.f32 %v4327_v10, %v1661_v35  ;;  %v1925_v19 = vsub.f32 1.0, %v1924_v50  ;;  %vm1928_vm4 = vweird.f32 %v4382_v36  ;;  %v1632_v50 = vpop.f32.mrf.mxu3 }
 0x25c   : > { %2471 = vst [vmem:[%s3924_s5 + $0xe0] sm:$0xff] %v2439_v25  ;;  %v2169_v42 = vsel %vm2168_vm2, %v2820_v62, %v2165_v5  ;;  %v4437_v14 = vadd.f32 %v4327_v10, %v1662_v9  ;;  %v1932_v47 = vand.u32 2147483647, %v4382_v36  ;;  %vm2319_vm5 = vcmp.ge.f32.partialorder %v4279_v43, 0.0  ;;  %v1570_v5 = vpop.f32.mrf.mxu0 }
 0x25d   : > { %v4439_v38 = vpop.eup %2825  ;;  %v2174_v29 = vsel %vm2171_vm3, %v2173_v15, %v2169_v42  ;;  %v1729_v55 = vand.u32 2147483647, %v4432_v26  ;;  %v1669_v8 = vmul.f32 %v4417_v61, %v1630_v18  ;;  %v1926_v6 = vmul.f32 %v2824_v41, %v1925_v19 }
 0x25e   : > { %v4445_v53 = vpop.eup %2827  ;;  %v2368_v7 = vmul.f32 %v4349_v49, %v2174_v29  ;;  %vm1929_vm6 = vweird.f32 %v2824_v41  ;;  %v4449_v39 = vadd.f32 1.0, %v4439_v38  ;;  %v1935_v48 = vor.u32 1.1754944e-38, %v1934_v57 }
 0x25f   : > { %v2830_v60 = vpop.eup %2829  ;;  %v2058_v37 = vand.u32 2147483647, %v4411_v1  ;;  %v2060_v4 = vand.u32 2147483648, %v4411_v1  ;;  %v4454_v46 = vadd.f32 1.0, %v4445_v53  ;;  %v1927_v45 = vadd.f32 %v2824_v41, %v1926_v6  ;;  %vm1930_vm7 = vmor %vm1928_vm4, %vm1929_vm6 }
 0x260   : > { %v2400_v2 = vsel %vm2336_vm0, %v2174_v29, %v2368_v7  ;;  %v2050_v49 = vmul.f32 %v2830_v60, %v4411_v1  ;;  %v1730_v40 = vand.u32 2147483647, %v4437_v14  ;;  %2831 = vrcp.f32 %v4449_v39 }
 0x261   : > { %v2432_v51 = vmul.f32 %v2400_v2, %v4268_v0  ;;  %v1761_v62 = vsub.f32 0.0, %v1729_v55  ;;  %v4465_v44 = vadd.f32 %v4327_v10, %v1669_v8  ;;  %v1931_v11 = vsel %vm1930_vm7, %v2824_v41, %v1927_v45  ;;  %v1592_v0 = vpop.f32.mrf.mxu1 }
 0x262   : > { %vm1933_vm8 = vcmp.eq.f32.partialorder %v1932_v47, 8.507059e+37  ;;  %v2051_v33 = vsub.f32 1.0, %v2050_v49  ;;  %2833 = vrcp.f32 %v4454_v46  ;;  %vm2054_vm9 = vweird.f32 %v4411_v1 }
 0x263   : > { %2464 = vst [vmem:[%s3924_s5 + $0xa8] sm:$0xff] %v2432_v51  ;;  %v1936_v28 = vsel %vm1933_vm8, %v1935_v48, %v1931_v11  ;;  %vm4470_vm10 = vcmp.eq.f32.partialorder %v2058_v37, 8.507059e+37  ;;  %vm2328_vm11 = vcmp.ge.f32.partialorder %v4302_v31, 0.0  ;;  %v1653_v36 = vmul.f32 %v4417_v61, %v1590_v56 }
 0x264   : > { %v2351_v24 = vmul.f32 %v4373_v27, %v1936_v28  ;;  %v2052_v58 = vmul.f32 %v2830_v60, %v2051_v33  ;;  %vm2055_vm12 = vweird.f32 %v2830_v60  ;;  %v2282_v12 = vand.u32 2147483647, %v4449_v39 }
 0x265   : > { %v2061_v13 = vor.u32 1.1754944e-38, %v2060_v4  ;;  %v1815_v20 = vmul.f32 1.442695, %v1761_v62  ;;  %v1762_v59 = vsub.f32 0.0, %v1730_v40  ;;  %v1737_v16 = vand.u32 2147483647, %v4465_v44  ;;  %vm2056_vm14 = vmor %vm2054_vm9, %vm2055_vm12 }
 0x266   : > { %v2383_v23 = vsel %vm2319_vm5, %v1936_v28, %v2351_v24  ;;  %v2053_v34 = vadd.f32 %v2830_v60, %v2052_v58  ;;  %vm2278_vm13 = vweird.f32 %v4449_v39  ;;  %v2284_v17 = vand.u32 2147483648, %v4449_v39  ;;  %v2832_v52 = vpop.eup %2831 }
 0x267   : > { %v1946_v27 = vand.u32 2147483647, %v4454_v46  ;;  %v2415_v3 = vmul.f32 %v2383_v23, %v4279_v43  ;;  %2835 = vpow2.f32 %v1815_v20  ;;  %v1817_v22 = vmul.f32 1.442695, %v1762_v59 }
 0x268   : > { %v1769_v54 = vsub.f32 0.0, %v1737_v16  ;;  %v2834_v35 = vpop.eup %2833  ;;  %v2057_v9 = vsel %vm2056_vm14, %v2830_v60, %v2053_v34  ;;  %v2274_v41 = vmul.f32 %v2832_v52, %v4449_v39  ;;  %v1948_v32 = vand.u32 2147483648, %v4454_v46 }
 0x269   : > { %v4490_v25 = vadd.f32 %v4327_v10, %v1653_v36  ;;  %2447 = vst [vmem:[%s3924_s5 + $0x20] sm:$0xff] %v2415_v3  ;;  %v2062_v43 = vsel %vm4470_vm10, %v2061_v13, %v2057_v9  ;;  %vm2279_vm15 = vweird.f32 %v2832_v52  ;;  %v1938_v1 = vmul.f32 %v2834_v35, %v4454_v46 }
 0x26a   : > { %2837 = vpow2.f32 %v1817_v22  ;;  %v2360_v18 = vmul.f32 %v4394_v63, %v2062_v43  ;;  %v2275_v15 = vsub.f32 1.0, %v2274_v41  ;;  %v1831_v57 = vmul.f32 1.442695, %v1769_v54  ;;  %vm2280_vm2 = vmor %vm2278_vm13, %vm2279_vm15 }
 0x26b   : > { %v1721_v42 = vand.u32 2147483647, %v4490_v25  ;;  %v1939_v19 = vsub.f32 1.0, %v1938_v1  ;;  %vm1943_vm0 = vweird.f32 %v2834_v35  ;;  %v1645_v29 = vmul.f32 %v4417_v61, %v1570_v5 }
 0x26c   : > { %v1670_v47 = vmul.f32 %v4417_v61, %v1632_v50  ;;  %v2392_v55 = vsel %vm2328_vm11, %v2062_v43, %v2360_v18  ;;  %v2276_v8 = vmul.f32 %v2832_v52, %v2275_v15  ;;  %2839 = vpow2.f32 %v1831_v57 }
 0x26d   : > { %v1753_v7 = vsub.f32 0.0, %v1721_v42  ;;  %v4502_v6 = vpop.eup %2835  ;;  %v2424_v63 = vmul.f32 %v2392_v55, %v4302_v31  ;;  %v1940_v60 = vmul.f32 %v2834_v35, %v1939_v19  ;;  %v4506_v48 = vadd.f32 %v4327_v10, %v1645_v29  ;;  %v1572_v29 = vpop.f32.mrf.mxu0 }
 0x26e   : > { %v4509_v37 = vadd.f32 %v4327_v10, %v1670_v47  ;;  %v2277_v4 = vadd.f32 %v2832_v52, %v2276_v8  ;;  %vm2283_vm1 = vcmp.eq.f32.partialorder %v2282_v12, 8.507059e+37  ;;  %v4512_v2 = vadd.f32 1.0, %v4502_v6 }
 0x26f   : > { %v1799_v45 = vmul.f32 1.442695, %v1753_v7  ;;  %2456 = vst [vmem:[%s3924_s5 + $0x68] sm:$0xff] %v2424_v63  ;;  %v2285_v31 = vor.u32 1.1754944e-38, %v2284_v17  ;;  %v1941_v40 = vadd.f32 %v2834_v35, %v1940_v60  ;;  %vm1942_vm3 = vweird.f32 %v4454_v46 }
 0x270   : > { %v4514_v49 = vpop.eup %2837  ;;  %vm1947_vm4 = vcmp.eq.f32.partialorder %v1946_v27, 8.507059e+37  ;;  %v2281_v56 = vsel %vm2280_vm2, %v2832_v52, %v2277_v4  ;;  %vm1944_vm5 = vmor %vm1942_vm3, %vm1943_vm0  ;;  %v1949_v51 = vor.u32 1.1754944e-38, %v1948_v32  ;;  %2841 = vrcp.f32 %v4512_v2 }
 0x271   : > { %v1713_v62 = vand.u32 2147483647, %v4506_v48  ;;  %v2286_v11 = vsel %vm2283_vm1, %v2285_v31, %v2281_v56  ;;  %v1945_v33 = vsel %vm1944_vm5, %v2834_v35, %v1941_v40  ;;  %v4525_v28 = vadd.f32 1.0, %v4514_v49 }
 0x272   : > { %v1738_v39 = vand.u32 2147483647, %v4509_v37  ;;  %v4528_v36 = vpop.eup %2839  ;;  %v2376_v46 = vmul.f32 %v4439_v38, %v2286_v11  ;;  %v1950_v24 = vsel %vm1947_vm4, %v1949_v51, %v1945_v33  ;;  %2843 = vpow2.f32 %v1799_v45 }
 0x273   : > { %vm2344_vm6 = vcmp.ge.f32.partialorder %v4330_v21, 0.0  ;;  %vm2320_vm7 = vcmp.ge.f32.partialorder %v4333_v30, 0.0  ;;  %v2352_v58 = vmul.f32 %v4445_v53, %v1950_v24  ;;  %2845 = vrcp.f32 %v4525_v28 }
 0x274   : > { %v2408_v12 = vsel %vm2344_vm6, %v2286_v11, %v2376_v46  ;;  %v2184_v13 = vand.u32 2147483647, %v4512_v2  ;;  %v4537_v20 = vadd.f32 1.0, %v4528_v36  ;;  %v1654_v38 = vmul.f32 %v4417_v61, %v1592_v0 }
 0x275   : > { %v2440_v59 = vmul.f32 %v2408_v12, %v4330_v21  ;;  %v2384_v16 = vsel %vm2320_vm7, %v1950_v24, %v2352_v58  ;;  %v1745_v23 = vsub.f32 0.0, %v1713_v62  ;;  %v1770_v34 = vsub.f32 0.0, %v1738_v39 }
 0x276   : > { %v2842_v17 = vpop.eup %2841  ;;  %v2416_v27 = vmul.f32 %v2384_v16, %v4333_v30  ;;  %v2186_v53 = vand.u32 2147483648, %v4512_v2  ;;  %2847 = vrcp.f32 %v4537_v20  ;;  %vm2180_vm8 = vweird.f32 %v4512_v2 }
 0x277   : > { %2472 = vst [vmem:[%s3924_s5 + $0xe8] sm:$0xff] %v2440_v59  ;;  %v2176_v52 = vmul.f32 %v2842_v17, %v4512_v2  ;;  %vm4550_vm9 = vcmp.eq.f32.partialorder %v2184_v13, 8.507059e+37  ;;  %v1783_v22 = vmul.f32 1.442695, %v1745_v23  ;;  %v1833_v54 = vmul.f32 1.442695, %v1770_v34 }
 0x278   : > { %v4547_v3 = vpop.eup %2843  ;;  %2448 = vst [vmem:[%s3924_s5 + $0x28] sm:$0xff] %v2416_v27  ;;  %v4555_v30 = vadd.f32 %v4327_v10, %v1654_v38  ;;  %v2198_v41 = vand.u32 2147483647, %v4525_v28  ;;  %v2200_v32 = vand.u32 2147483648, %v4525_v28  ;;  %v2187_v50 = vor.u32 1.1754944e-38, %v2186_v53 }
 0x279   : > { %v2846_v35 = vpop.eup %2845  ;;  %v2177_v9 = vsub.f32 1.0, %v2176_v52  ;;  %v4560_v5 = vadd.f32 1.0, %v4547_v3  ;;  %vm2337_vm10 = vcmp.ge.f32.partialorder %v4432_v26, 0.0  ;;  %vm2194_vm11 = vweird.f32 %v4525_v28 }
 0x27a   : > { %v2190_v43 = vmul.f32 %v2846_v35, %v4525_v28  ;;  %2849 = vpow2.f32 %v1783_v22  ;;  %vm2181_vm12 = vweird.f32 %v2842_v17  ;;  %v2296_v18 = vand.u32 2147483647, %v4537_v20 }
 0x27b   : > { %v2178_v1 = vmul.f32 %v2842_v17, %v2177_v9  ;;  %2851 = vrcp.f32 %v4560_v5  ;;  %v2298_v42 = vand.u32 2147483648, %v4537_v20  ;;  %v1722_v19 = vand.u32 2147483647, %v4555_v30  ;;  %vm2182_vm15 = vmor %vm2180_vm8, %vm2181_vm12 }
 0x27c   : > { %v2848_v15 = vpop.eup %2847  ;;  %v2191_v57 = vsub.f32 1.0, %v2190_v43  ;;  %2853 = vpow2.f32 %v1833_v54  ;;  %vm4569_vm13 = vcmp.eq.f32.partialorder %v2198_v41, 8.507059e+37  ;;  %v2201_v8 = vor.u32 1.1754944e-38, %v2200_v32 }
 0x27d   : > { %v2179_v47 = vadd.f32 %v2842_v17, %v2178_v1  ;;  %vm2338_vm14 = vcmp.ge.f32.partialorder %v4437_v14, 0.0  ;;  %v2288_v7 = vmul.f32 %v2848_v15, %v4537_v20  ;;  %vm2195_vm0 = vweird.f32 %v2846_v35 }
 0x27e   : > { %v2192_v63 = vmul.f32 %v2846_v35, %v2191_v57  ;;  %vm2292_vm1 = vweird.f32 %v4537_v20  ;;  %v1754_v60 = vsub.f32 0.0, %v1722_v19  ;;  %vm4578_vm2 = vcmp.eq.f32.partialorder %v2296_v18, 8.507059e+37  ;;  %vm2196_vm3 = vmor %vm2194_vm11, %vm2195_vm0 }
 0x27f   : > { %v2183_v4 = vsel %vm2182_vm15, %v2842_v17, %v2179_v47  ;;  %v2289_v45 = vsub.f32 1.0, %v2288_v7  ;;  %v1646_v40 = vmul.f32 %v4417_v61, %v1572_v29  ;;  %v2299_v62 = vor.u32 1.1754944e-38, %v2298_v42 }
 0x280   : > { %v4583_v56 = vpop.eup %2849  ;;  %v2188_v51 = vsel %vm4550_vm9, %v2187_v50, %v2183_v4  ;;  %v2193_v2 = vadd.f32 %v2846_v35, %v2192_v63  ;;  %v1801_v11 = vmul.f32 1.442695, %v1754_v60  ;;  %vm2293_vm4 = vweird.f32 %v2848_v15 }
 0x281   : > { %v2852_v33 = vpop.eup %2851  ;;  %v2369_v39 = vmul.f32 %v4502_v6, %v2188_v51  ;;  %v2290_v0 = vmul.f32 %v2848_v15, %v2289_v45  ;;  %v4591_v46 = vadd.f32 1.0, %v4583_v56  ;;  %v4597_v12 = vadd.f32 %v4327_v10, %v1646_v40  ;;  %vm2294_vm5 = vmor %vm2292_vm1, %vm2293_vm4 }
 0x282   : > { %v4593_v61 = vpop.eup %2853  ;;  %v2197_v24 = vsel %vm2196_vm3, %v2846_v35, %v2193_v2  ;;  %v2064_v58 = vmul.f32 %v2852_v33, %v4560_v5  ;;  %2855 = vpow2.f32 %v1801_v11  ;;  %v2072_v10 = vand.u32 2147483647, %v4560_v5 }
 0x283   : > { %v2401_v6 = vsel %vm2337_vm10, %v2188_v51, %v2369_v39  ;;  %v2202_v28 = vsel %vm4569_vm13, %v2201_v8, %v2197_v24  ;;  %v2291_v13 = vadd.f32 %v2848_v15, %v2290_v0  ;;  %2857 = vrcp.f32 %v4591_v46 }
 0x284   : > { %v2433_v38 = vmul.f32 %v2401_v6, %v4432_v26  ;;  %v2370_v59 = vmul.f32 %v4514_v49, %v2202_v28  ;;  %v2065_v16 = vsub.f32 1.0, %v2064_v58  ;;  %vm2069_vm6 = vweird.f32 %v2852_v33 }
 0x285   : > { %v2295_v23 = vsel %vm2294_vm5, %v2848_v15, %v2291_v13  ;;  %v2074_v34 = vand.u32 2147483648, %v4560_v5  ;;  %v4611_v17 = vadd.f32 1.0, %v4593_v61  ;;  %v1714_v27 = vand.u32 2147483647, %v4597_v12 }
 0x286   : > { %2465 = vst [vmem:[%s3924_s5 + $0xb0] sm:$0xff] %v2433_v38  ;;  %v2402_v26 = vsel %vm2338_vm14, %v2202_v28, %v2370_v59  ;;  %v2300_v49 = vsel %vm4578_vm2, %v2299_v62, %v2295_v23  ;;  %v2066_v20 = vmul.f32 %v2852_v33, %v2065_v16  ;;  %vm2345_vm7 = vcmp.ge.f32.partialorder %v4465_v44, 0.0 }
 0x287   : > { %v2434_v53 = vmul.f32 %v2402_v26, %v4437_v14  ;;  %v2377_v52 = vmul.f32 %v4528_v36, %v2300_v49  ;;  %vm2068_vm8 = vweird.f32 %v4560_v5  ;;  %2859 = vrcp.f32 %v4611_v17 }
 0x288   : > { %v4621_v21 = vpop.eup %2855  ;;  %v2067_v22 = vadd.f32 %v2852_v33, %v2066_v20  ;;  %vm2070_vm9 = vmor %vm2068_vm8, %vm2069_vm6  ;;  %v2075_v9 = vor.u32 1.1754944e-38, %v2074_v34  ;;  %v1746_v36 = vsub.f32 0.0, %v1714_v27  ;;  %vm2073_vm10 = vcmp.eq.f32.partialorder %v2072_v10, 8.507059e+37 }
 0x289   : > { %v2858_v54 = vpop.eup %2857  ;;  %2466 = vst [vmem:[%s3924_s5 + $0xb8] sm:$0xff] %v2434_v53  ;;  %v2409_v35 = vsel %vm2345_vm7, %v2300_v49, %v2377_v52  ;;  %v4629_v14 = vadd.f32 1.0, %v4621_v21  ;;  %vm2329_vm11 = vcmp.ge.f32.partialorder %v4490_v25, 0.0  ;;  %v1962_v18 = vand.u32 2147483648, %v4591_v46 }
 0x28a   : > { %v2441_v41 = vmul.f32 %v2409_v35, %v4465_v44  ;;  %v2071_v32 = vsel %vm2070_vm9, %v2852_v33, %v2067_v22  ;;  %v1952_v50 = vmul.f32 %v2858_v54, %v4591_v46  ;;  %v1785_v15 = vmul.f32 1.442695, %v1746_v36 }
 0x28b   : > { %v2076_v43 = vsel %vm2073_vm10, %v2075_v9, %v2071_v32  ;;  %2861 = vrcp.f32 %v4629_v14  ;;  %vm1957_vm12 = vweird.f32 %v2858_v54  ;;  %v1960_v19 = vand.u32 2147483647, %v4591_v46 }
 0x28c   : > { %2473 = vst [vmem:[%s3924_s5 + $0xf0] sm:$0xff] %v2441_v41  ;;  %v2361_v5 = vmul.f32 %v4547_v3, %v2076_v43  ;;  %v1953_v1 = vsub.f32 1.0, %v1952_v50  ;;  %vm1956_vm13 = vweird.f32 %v4591_v46  ;;  %2863 = vpow2.f32 %v1785_v15 }
 0x28d   : > { %v2860_v57 = vpop.eup %2859  ;;  %vm1958_vm14 = vmor %vm1956_vm13, %vm1957_vm12  ;;  %v1963_v8 = vor.u32 1.1754944e-38, %v1962_v18  ;;  %v2312_v63 = vand.u32 2147483648, %v4611_v17  ;;  %vm1961_vm15 = vcmp.eq.f32.partialorder %v1960_v19, 8.507059e+37  ;;  %vm2321_vm1 = vcmp.ge.f32.partialorder %v4506_v48, 0.0 }
 0x28e   : > { %v2393_v42 = vsel %vm2329_vm11, %v2076_v43, %v2361_v5  ;;  %v1954_v44 = vmul.f32 %v2858_v54, %v1953_v1  ;;  %v2302_v47 = vmul.f32 %v2860_v57, %v4611_v17  ;;  %vm2307_vm0 = vweird.f32 %v2860_v57 }
 0x28f   : > { %v2425_v29 = vmul.f32 %v2393_v42, %v4490_v25  ;;  %v2310_v25 = vand.u32 2147483647, %v4611_v17  ;;  %vm2306_vm2 = vweird.f32 %v4611_v17  ;;  %v2313_v62 = vor.u32 1.1754944e-38, %v2312_v63 }
 0x290   : > { %v1955_v55 = vadd.f32 %v2858_v54, %v1954_v44  ;;  %v2303_v7 = vsub.f32 1.0, %v2302_v47  ;;  %v2088_v11 = vand.u32 2147483648, %v4629_v14  ;;  %vm2308_vm3 = vmor %vm2306_vm2, %vm2307_vm0  ;;  %v2086_v46 = vand.u32 2147483647, %v4629_v14 }
 0x291   : > { %v2862_v3 = vpop.eup %2861  ;;  %2457 = vst [vmem:[%s3924_s5 + $0x70] sm:$0xff] %v2425_v29  ;;  %vm2311_vm5 = vcmp.eq.f32.partialorder %v2310_v25, 8.507059e+37  ;;  %vm2082_vm6 = vweird.f32 %v4629_v14  ;;  %vm2346_vm8 = vcmp.ge.f32.partialorder %v4509_v37, 0.0  ;;  %vm2330_vm10 = vcmp.ge.f32.partialorder %v4555_v30, 0.0 }
 0x292   : > { %v1959_v60 = vsel %vm1958_vm14, %v2858_v54, %v1955_v55  ;;  %v2078_v4 = vmul.f32 %v2862_v3, %v4629_v14  ;;  %v2304_v31 = vmul.f32 %v2860_v57, %v2303_v7  ;;  %v2864_v33 = vpop.eup %2863  ;;  %vm2083_vm4 = vweird.f32 %v2862_v3 }
 0x293   : > { %v1964_v45 = vsel %vm1961_vm15, %v1963_v8, %v1959_v60  ;;  %vm2084_vm7 = vmor %vm2082_vm6, %vm2083_vm4  ;;  %v2089_v38 = vor.u32 1.1754944e-38, %v2088_v11  ;;  %vm2087_vm9 = vcmp.eq.f32.partialorder %v2086_v46, 8.507059e+37  ;;  %vm2322_vm15 = vcmp.ge.f32.partialorder %v4597_v12, 0.0 }
 0x294   : > { %v2353_v40 = vmul.f32 %v4583_v56, %v1964_v45  ;;  %v2079_v51 = vsub.f32 1.0, %v2078_v4  ;;  %v2305_v2 = vadd.f32 %v2860_v57, %v2304_v31  ;;  %v1842_v56 = vadd.f32 1.0, %v2864_v33 }
 0x296   : > { %v2385_v39 = vsel %vm2321_vm1, %v1964_v45, %v2353_v40  ;;  %v2080_v0 = vmul.f32 %v2862_v3, %v2079_v51  ;;  %v2309_v58 = vsel %vm2308_vm3, %v2860_v57, %v2305_v2  ;;  %2865 = vrcp.f32 %v1842_v56 }
 0x297   : > { %v2417_v24 = vmul.f32 %v2385_v39, %v4506_v48  ;;  %v2314_v6 = vsel %vm2311_vm5, %v2313_v62, %v2309_v58  ;;  %v1976_v20 = vand.u32 2147483648, %v1842_v56  ;;  %v1974_v53 = vand.u32 2147483647, %v1842_v56 }
 0x298   : > { %v2081_v28 = vadd.f32 %v2862_v3, %v2080_v0  ;;  %v2378_v13 = vmul.f32 %v4593_v61, %v2314_v6  ;;  %vm1970_vm12 = vweird.f32 %v1842_v56 }
 0x299   : > { %2449 = vst [vmem:[%s3924_s5 + $0x30] sm:$0xff] %v2417_v24  ;;  %vm1975_vm14 = vcmp.eq.f32.partialorder %v1974_v53, 8.507059e+37 }
 0x29a   : > { %v2085_v59 = vsel %vm2084_vm7, %v2862_v3, %v2081_v28  ;;  %v2410_v48 = vsel %vm2346_vm8, %v2314_v6, %v2378_v13 }
 0x29b   : > { %v2090_v16 = vsel %vm2087_vm9, %v2089_v38, %v2085_v59  ;;  %v2442_v10 = vmul.f32 %v2410_v48, %v4509_v37  ;;  %v1977_v37 = vor.u32 1.1754944e-38, %v1976_v20 }
 0x29c   : > { %v2362_v23 = vmul.f32 %v4621_v21, %v2090_v16  ;;  %v2866_v61 = vpop.eup %2865 }
 0x29d   : > { %2474 = vst [vmem:[%s3924_s5 + $0xf8] sm:$0xff] %v2442_v10  ;;  %v1966_v26 = vmul.f32 %v2866_v61, %v1842_v56  ;;  %vm1971_vm11 = vweird.f32 %v2866_v61 }
 0x29e   : > { %v2394_v34 = vsel %vm2330_vm10, %v2090_v16, %v2362_v23  ;;  %vm1972_vm13 = vmor %vm1970_vm12, %vm1971_vm11 }
 0x29f   : > { %v2426_v17 = vmul.f32 %v2394_v34, %v4555_v30  ;;  %v1967_v49 = vsub.f32 1.0, %v1966_v26 }
 0x2a1   : > { %2458 = vst [vmem:[%s3924_s5 + $0x78] sm:$0xff] %v2426_v17  ;;  %v1968_v27 = vmul.f32 %v2866_v61, %v1967_v49 }
 0x2a3   : > { %v1969_v52 = vadd.f32 %v2866_v61, %v1968_v27 }
 0x2a5   : > { %v1973_v30 = vsel %vm1972_vm13, %v2866_v61, %v1969_v52 }
 0x2a6   : > { %v1978_v21 = vsel %vm1975_vm14, %v1977_v37, %v1973_v30 }
 0x2a7   : > { %v2354_v22 = vmul.f32 %v2864_v33, %v1978_v21 }
 0x2a9   : > { %v2386_v54 = vsel %vm2322_vm15, %v1978_v21, %v2354_v22 }
 0x2aa   : > { %v2418_v35 = vmul.f32 %v2386_v54, %v4597_v12 }
 0x2ac   : > { %2450 = vst [vmem:[%s3924_s5 + $0x38] sm:$0xff] %v2418_v35 }
 0x2ad   : > { %2897 = shalt.err (!%p2894_p3)
}
 0x2ae   : > { %s2939_s29 = smov 128  }
 0x2af   : > { %2692 = dma.vmem_to_hbm [thread:$0]  (%p3003_p5), %s2489_s20, 4096, %s2491_s22, %s2476_s19, %s2939_s29, %s2939_s29, %s2935_s6  }
 0x2b0 PF: > { %p2698_p4 = scmp.ge.s32.totalorder %s2932_s18, 2  ;;  %s2505_s5 = sand.u32 1, %s2920_s15  }
 0x2b1   : > { %s2506_s10 = scalar_lea.sflag [#allocation4], %s2505_s5 }
 0x2b2   : > { %p2695_p7 = pnand %p2698_p4, %p3007_p6 }
 0x2b4   : > { %p2696_p8 = pneg %p2695_p7 }
 0x2b6   : > { %2915 = dma.done.wait (%p2696_p8), %s2506_s10, 4096  }
 0x2b7   : > { %2917 = vsyncadd (%p2696_p8), %s2506_s10, 4294963200  ;;  %p14_p9 = scmp.ge.s32.totalorder %s2990_s21, 4   ;;  %s4757_s15 = smov %s2924_s16 }
 0x2b8   : > { %s4758_s16 = smov %s2928_s17  ;;  %s4759_s17 = smov %s3001_s24 }
 0x2b9   : > { %s4760_s18 = smov %s2990_s21  ;;  %16 = sbr.rel (!%p14_p9) target bundleno = 3 (0x3), region = 72 }
 0x2be   :  { %2512 = vsyncpa [#allocation4], 1 }
 0x2bf   :  { %2514 = vsyncpa [#allocation4 + $0x1], 1 }

</bundles_post_ra>
